<compile_context>
chip_gen: v7x
topology: tpu7x:2x2x1
jax: 0.10.0
libtpu: 0.0.40
codegen_flags: <defaults>
</compile_context>

<pallas_src>
import functools

import jax
import jax.numpy as jnp
import numpy as np
from jax.experimental import pallas as pl
from jax.experimental.pallas import tpu as pltpu


# ---------------------------------------------------------------------------
# Irreps description: list of (multiplicity, l).  First entry must be l == 0.
# ---------------------------------------------------------------------------
IRREPS = [(8, 0), (8, 1), (4, 2)]          # "8x0e + 8x1o + 4x2e"
SCALAR_MUL = IRREPS[0][0]
FEAT_DIM = sum(mul * (2 * l + 1) for mul, l in IRREPS)          # 8 + 24 + 20 = 52
NUM_VEC_CH = sum(mul for mul, l in IRREPS[1:])                  # 8 + 4 = 12


def _round_up(x, m):
    return (x + m - 1) // m * m


def _build_projection_matrices():
    """P: (D, M) squared-feature -> per-channel scaled sq-norm (1/sqrt(2l+1) weights).
       E: (M, D) per-channel gate -> broadcast back onto the vector feature slots."""
    P = np.zeros((FEAT_DIM, NUM_VEC_CH), dtype=np.float32)
    E = np.zeros((NUM_VEC_CH, FEAT_DIM), dtype=np.float32)
    off = SCALAR_MUL
    ch = 0
    for mul, l in IRREPS[1:]:
        d = 2 * l + 1
        w = 1.0 / np.sqrt(d)                 # e3nn wigner_3j(l,l,0) diagonal factor
        for u in range(mul):
            for m in range(d):
                j = off + u * d + m
                P[j, ch] = w
                E[ch, j] = 1.0
            ch += 1
        off += mul * d
    return jnp.asarray(P), jnp.asarray(E)


# ---------------------------------------------------------------------------
# Pallas kernel
# ---------------------------------------------------------------------------
def norm_act_kernel(x_ref, p_ref, e_ref, o_ref, *, scalar_idx):
    # Upcast to f32 for the compute path (safe for bf16 I/O; required on v5e anyway).
    x = x_ref[...].astype(jnp.float32)                           # (TN, D)

    # Per-channel (scaled) squared norms of the higher-order features via a small matmul.
    sq = x * x
    norm2 = jnp.dot(sq, p_ref[...], preferred_element_type=jnp.float32,
                    precision=jax.lax.Precision.HIGHEST)         # (TN, M)
    gate = jax.nn.sigmoid(jnp.sqrt(norm2 + 1e-8))                # (TN, M)

    # Broadcast each channel gate back over its (2l+1) components.
    gate_full = jnp.dot(gate, e_ref[...], preferred_element_type=jnp.float32,
                        precision=jax.lax.Precision.HIGHEST)     # (TN, D)

    # Disjoint writes: scalar slice gets silu, vector slice gets norm-gated features.
    xs = x[:, :scalar_idx]
    o_ref[:, :scalar_idx] = (xs * jax.nn.sigmoid(xs)).astype(o_ref.dtype)
    o_ref[:, scalar_idx:] = (gate_full[:, scalar_idx:] * x[:, scalar_idx:]).astype(o_ref.dtype)


# ---------------------------------------------------------------------------
# Wrapper
# ---------------------------------------------------------------------------
def norm_activation_pallas(features, *, tile_n=8192):
    """features: (..., FEAT_DIM), float32 or bfloat16.

    tile_n is a tunable: ~2-4K rows is enough on v5e, 4-8K on v6e, >=8K on v7x.
    """
    lead = features.shape[:-1]
    assert features.shape[-1] == FEAT_DIM
    xf = features.reshape(-1, FEAT_DIM)
    n = xf.shape[0]

    # Tile sizing: big tiles amortize per-step overhead; cap at (row-padded) N.
    tn = min(tile_n, _round_up(max(n, 8), 8))
    n_pad = _round_up(n, tn)
    if n_pad != n:
        # Zero-padded rows are numerically benign (norm(0) = sqrt(1e-8)) and are sliced off below.
        xf = jnp.pad(xf, ((0, n_pad - n), (0, 0)))

    P, E = _build_projection_matrices()
    grid = (n_pad // tn,)

    itemsize = jnp.dtype(features.dtype).itemsize
    cost = pl.CostEstimate(
        flops=int(n_pad * (FEAT_DIM                          # x*x
                           + 2 * FEAT_DIM * NUM_VEC_CH       # norm matmul
                           + 2 * NUM_VEC_CH * FEAT_DIM       # gate broadcast matmul
                           + 3 * FEAT_DIM)),                 # gating / silu muls
        transcendentals=int(n_pad * (SCALAR_MUL + 2 * NUM_VEC_CH)),   # sigmoids + sqrt
        bytes_accessed=int(2 * n_pad * FEAT_DIM * itemsize
                           + (P.size + E.size) * 4),
    )

    out = pl.pallas_call(
        functools.partial(norm_act_kernel, scalar_idx=SCALAR_MUL),
        out_shape=jax.ShapeDtypeStruct((n_pad, FEAT_DIM), features.dtype),
        grid=grid,
        in_specs=[
            pl.BlockSpec((tn, FEAT_DIM), lambda i: (i, 0)),
            pl.BlockSpec((FEAT_DIM, NUM_VEC_CH), lambda i: (0, 0)),
            pl.BlockSpec((NUM_VEC_CH, FEAT_DIM), lambda i: (0, 0)),
        ],
        out_specs=pl.BlockSpec((tn, FEAT_DIM), lambda i: (i, 0)),
        compiler_params=pltpu.CompilerParams(
            dimension_semantics=("parallel",),          # shards grid steps across v7x's 2 TCs
            vmem_limit_bytes=32 * 1024 * 1024,          # large tiles exceed v5e's 16 MiB default
        ),
        cost_estimate=cost,
    )(xf, P, E)

    if n_pad != n:
        out = out[:n]
    return out.reshape(*lead, FEAT_DIM)


# ---------------------------------------------------------------------------
# Pure-JAX reference (mirrors the PyTorch/e3nn forward exactly)
# ---------------------------------------------------------------------------
def norm_activation_ref(features):
    lead = features.shape[:-1]
    outs = [jax.nn.silu(features[..., :SCALAR_MUL])]
    off = SCALAR_MUL
    for mul, l in IRREPS[1:]:
        d = 2 * l + 1
        v = features[..., off:off + mul * d].reshape(*lead, mul, d)
        norm = jnp.sqrt(jnp.sum(v * v, axis=-1) / jnp.sqrt(d) + 1e-8)
        gate = jax.nn.sigmoid(norm)
        outs.append((gate[..., None] * v).reshape(*lead, mul * d))
        off += mul * d
    return jnp.concatenate(outs, axis=-1)


if __name__ == "__main__":
    key = jax.random.PRNGKey(0)
    # batch=2, nodes=64, irreps_dim=52  ->  (2, 64, 52)
    x = jax.random.normal(key, (2, 64, FEAT_DIM), dtype=jnp.float32)

    y = norm_activation_pallas(x)
    y = jax.block_until_ready(y)

    y_ref = norm_activation_ref(x)
    np.testing.assert_allclose(np.asarray(y), np.asarray(y_ref), rtol=1e-5, atol=1e-5)

    # Also exercise the non-divisible / padded path once (correctness of remainder handling).
    x2 = jax.random.normal(jax.random.PRNGKey(1), (3, 37, FEAT_DIM), dtype=jnp.float32)
    y2 = jax.block_until_ready(norm_activation_pallas(x2, tile_n=64))
    np.testing.assert_allclose(np.asarray(y2), np.asarray(norm_activation_ref(x2)),
                               rtol=1e-5, atol=1e-5)

    print("KERNEL_OK")
</pallas_src>

<mosaic_0001>
module attributes {stable_mosaic.version = 11 : i64} {
  func.func @norm_act_kernel(%arg0: i32, %arg1: memref<128x52xf32, #tpu.memory_space<vmem>>, %arg2: memref<52x12xf32, #tpu.memory_space<vmem>>, %arg3: memref<12x52xf32, #tpu.memory_space<vmem>>, %arg4: memref<128x52xf32, #tpu.memory_space<vmem>>) attributes {dimension_semantics = [#tpu.dimension_semantics<parallel>], iteration_bounds = array<i64: 1>, scalar_prefetch = 0 : i64, scratch_operands = 0 : i64, tpu.core_type = #tpu.core_type<tc>, window_params = [{transform_indices = @transform_0, window_bounds = array<i64: 128, 52>}, {pipeline_mode = #tpu.pipeline_mode<synchronous>, transform_indices = @transform_1, window_bounds = array<i64: 52, 12>}, {pipeline_mode = #tpu.pipeline_mode<synchronous>, transform_indices = @transform_2, window_bounds = array<i64: 12, 52>}, {transform_indices = @transform_3, window_bounds = array<i64: 128, 52>}]} {
    %c0 = arith.constant 0 : index
    %c0_0 = arith.constant 0 : index
    %0 = vector.load %arg1[%c0, %c0_0] : memref<128x52xf32, #tpu.memory_space<vmem>>, vector<128x52xf32>
    %1 = arith.mulf %0, %0 : vector<128x52xf32>
    %c0_1 = arith.constant 0 : index
    %c0_2 = arith.constant 0 : index
    %2 = vector.load %arg2[%c0_1, %c0_2] : memref<52x12xf32, #tpu.memory_space<vmem>>, vector<52x12xf32>
    %cst = arith.constant dense<0.000000e+00> : vector<128x12xf32>
    %3 = tpu.matmul %1, %2, %cst {dimension_numbers = #tpu.dot_dimension_numbers<[1], [0], [0], [1], [0, 0, 1, 1], [], []>, precision = #tpu.contract_precision<fp32>} : vector<128x52xf32>, vector<52x12xf32>, vector<128x12xf32> -> vector<128x12xf32>
    %cst_3 = arith.constant 9.99999993E-9 : f32
    %4 = vector.broadcast %cst_3 : f32 to vector<128x12xf32>
    %5 = arith.addf %3, %4 : vector<128x12xf32>
    %6 = math.sqrt %5 : vector<128x12xf32>
    %7 = arith.negf %6 : vector<128x12xf32>
    %8 = math.exp %7 : vector<128x12xf32>
    %cst_4 = arith.constant 1.000000e+00 : f32
    %9 = vector.broadcast %cst_4 : f32 to vector<128x12xf32>
    %10 = arith.addf %9, %8 : vector<128x12xf32>
    %11 = arith.divf %9, %10 : vector<128x12xf32>
    %c0_5 = arith.constant 0 : index
    %c0_6 = arith.constant 0 : index
    %12 = vector.load %arg3[%c0_5, %c0_6] : memref<12x52xf32, #tpu.memory_space<vmem>>, vector<12x52xf32>
    %cst_7 = arith.constant dense<0.000000e+00> : vector<128x52xf32>
    %13 = tpu.matmul %11, %12, %cst_7 {dimension_numbers = #tpu.dot_dimension_numbers<[1], [0], [0], [1], [0, 0, 1, 1], [], []>, precision = #tpu.contract_precision<fp32>} : vector<128x12xf32>, vector<12x52xf32>, vector<128x52xf32> -> vector<128x52xf32>
    %14 = vector.extract_strided_slice %0 {offsets = [0, 0], sizes = [128, 8], strides = [1, 1]} : vector<128x52xf32> to vector<128x8xf32>
    %15 = arith.negf %14 : vector<128x8xf32>
    %16 = math.exp %15 : vector<128x8xf32>
    %cst_8 = arith.constant 1.000000e+00 : f32
    %17 = vector.broadcast %cst_8 : f32 to vector<128x8xf32>
    %18 = arith.addf %17, %16 : vector<128x8xf32>
    %19 = arith.divf %17, %18 : vector<128x8xf32>
    %20 = arith.mulf %14, %19 : vector<128x8xf32>
    %c0_9 = arith.constant 0 : index
    %c0_10 = arith.constant 0 : index
    %21 = vector.load %arg4[%c0_9, %c0_10] : memref<128x52xf32, #tpu.memory_space<vmem>>, vector<128x8xf32>
    tpu.vector_store %arg4[%c0_9, %c0_10], %20 {strides = array<i32>} : memref<128x52xf32, #tpu.memory_space<vmem>>, vector<128x8xf32>,
    %22 = vector.extract_strided_slice %13 {offsets = [0, 8], sizes = [128, 44], strides = [1, 1]} : vector<128x52xf32> to vector<128x44xf32>
    %23 = vector.extract_strided_slice %0 {offsets = [0, 8], sizes = [128, 44], strides = [1, 1]} : vector<128x52xf32> to vector<128x44xf32>
    %24 = arith.mulf %22, %23 : vector<128x44xf32>
    %c0_11 = arith.constant 0 : index
    %c8 = arith.constant 8 : index
    %25 = vector.load %arg4[%c0_11, %c8] : memref<128x52xf32, #tpu.memory_space<vmem>>, vector<128x44xf32>
    tpu.vector_store %arg4[%c0_11, %c8], %24 {strides = array<i32>} : memref<128x52xf32, #tpu.memory_space<vmem>>, vector<128x44xf32>,
    return
  }
  func.func @transform_0(%arg0: i32) -> (i32, i32) {
    %c0_i32 = arith.constant 0 : i32
    %c0_i32_0 = arith.constant 0 : i32
    return %arg0, %c0_i32 : i32, i32
  }
  func.func @transform_1(%arg0: i32) -> (i32, i32) {
    %c0_i32 = arith.constant 0 : i32
    %c0_i32_0 = arith.constant 0 : i32
    %c0_i32_1 = arith.constant 0 : i32
    return %c0_i32, %c0_i32_0 : i32, i32
  }
  func.func @transform_2(%arg0: i32) -> (i32, i32) {
    %c0_i32 = arith.constant 0 : i32
    %c0_i32_0 = arith.constant 0 : i32
    %c0_i32_1 = arith.constant 0 : i32
    return %c0_i32, %c0_i32_0 : i32, i32
  }
  func.func @transform_3(%arg0: i32) -> (i32, i32) {
    %c0_i32 = arith.constant 0 : i32
    %c0_i32_0 = arith.constant 0 : i32
    return %arg0, %c0_i32 : i32, i32
  }
}

</mosaic_0001>

<bundles_post_ra>
// kernel: tpu_custom_call.1
= control target key start
LH: loop header
LB: loop body
LE: loop exit
PB: predicated region body
PF: predicated region fallthrough
CT: control target
= control target key end

     0   :  { %vm53_vm0 = vcmask 424960   ;;  %vm102_vm1 = vcmask 1043456   ;;  %s5118_s1 = inlined_call_operand.vmem [shape: f32[52,12], index: 1, kind: input, shape index: {}]   ;;  %s5119_s0 = inlined_call_operand.vmem [shape: f32[128,52], index: 0, kind: input, shape index: {}]   ;;  %s5120_s2 = inlined_call_operand.vmem [shape: f32[12,52], index: 2, kind: input, shape index: {}]   ;;  %s5121_s3 = inlined_call_operand.vmem [shape: f32[128,52], index: 3, kind: output, shape index: {}]  }
   0x1   :  { %v46_v0 = vld [vmem:[%s5118_s1] sm:$0xff]  ;;  %v47_v1 = vld [vmem:[%s5118_s1 + $0x8] sm:$0xff]  ;;  %v3958_v2 = vld [vmem:[%s5118_s1 + $0x10] sm:$0xff] }
   0x2   :  { %v107_v3 = vand.u32 4294901760, %v46_v0  ;;  %v110_v4 = vand.u32 4294901760, %v47_v1  ;;  %v3963_v5 = vld [vmem:[%s5118_s1 + $0x18] sm:$0xff]  ;;  %v113_v6 = vand.u32 4294901760, %v3958_v2  ;;  %v3969_v7 = vld [vmem:[%s5118_s1 + $0x20] sm:$0xff]  ;;  %v3974_v8 = vld [vmem:[%s5118_s1 + $0x28] sm:$0xff] }
   0x3   :  { %v116_v9 = vand.u32 4294901760, %v3963_v5  ;;  %v14_v10 = vld [vmem:[%s5119_s0] sm:$0xff]  ;;  %v119_v12 = vand.u32 4294901760, %v3969_v7  ;;  %v122_v13 = vand.u32 4294901760, %v3974_v8  ;;  %v15_v15 = vld [vmem:[%s5119_s0 + $0x8] sm:$0xff]  ;;  %v16_v16 = vld [vmem:[%s5119_s0 + $0x10] sm:$0xff] }
   0x4   :  { %v3980_v11 = vpack.c.bf16 %v110_v4, %v107_v3  ;;  %v30_v14 = vmul.f32 %v14_v10, %v14_v10  ;;  %v52_v18 = vld [vmem:[%s5118_s1 + $0x30] sm:$0xf]  ;;  %v31_v19 = vmul.f32 %v15_v15, %v15_v15  ;;  %v4001_v21 = vsub.f32 %v46_v0, %v107_v3  ;;  %v17_v22 = vld [vmem:[%s5119_s0 + $0x18] sm:$0xff]  ;;  %v18_v38 = vld [vmem:[%s5119_s0 + $0x20] sm:$0xff] }
   0x5   :  { %v3994_v17 = vpack.c.bf16 %v116_v9, %v113_v6  ;;  %v4010_v25 = vsub.f32 %v47_v1, %v110_v4  ;;  %v32_v26 = vmul.f32 %v16_v16, %v16_v16  ;;  %v4017_v27 = vpack.c.bf16 %v122_v13, %v119_v12  ;;  %v19_v47 = vld [vmem:[%s5119_s0 + $0x28] sm:$0xff] }
   0x6   :  { %3482 = vmatprep.subr.bf16.mxu0 %v3980_v11  ;;  %v55_v20 = vsel %vm53_vm0, %v30_v14, 0  ;;  %v58_v24 = vsel %vm53_vm0, %v31_v19, 0  ;;  %v4020_v28 = vsel %vm102_vm1, %v52_v18, 0  ;;  %v341_v30 = vand.u32 4294901760, %v4001_v21  ;;  %v20_v14 = vld [vmem:[%s5119_s0 + $0x30] sm:$0xff] }
   0x7   :  { %3484 = vmatpush3.bf16.msra.mxu0 %v3980_v11  ;;  %v4007_v23 = vand.u32 4294901760, %v55_v20  ;;  %v4022_v29 = vand.u32 4294901760, %v58_v24  ;;  %v348_v32 = vand.u32 4294901760, %v4010_v25  ;;  %v61_v33 = vsel %vm53_vm0, %v32_v26, 0 }
   0x8   :  { %3486 = vmatprep.subr.bf16.mxu0 %v3994_v17  ;;  %v33_v34 = vmul.f32 %v17_v22, %v17_v22  ;;  %v342_v36 = vsub.f32 %v4001_v21, %v341_v30  ;;  %v4036_v37 = vand.u32 4294901760, %v61_v33  ;;  %v4043_v39 = vand.u32 4294901760, %v4020_v28 }
   0x9   :  { %v4026_v31 = vsub.f32 %v55_v20, %v4007_v23  ;;  %v4031_v35 = vsub.f32 %v58_v24, %v4022_v29  ;;  %v349_v41 = vsub.f32 %v4010_v25, %v348_v32  ;;  %v34_v50 = vmul.f32 %v18_v38, %v18_v38  ;;  %v22_v38 = vld [vmem:[%s5119_s0 + $0x40] sm:$0xff] }
   0xa   :  { %v64_v42 = vsel %vm53_vm0, %v33_v34, 0  ;;  %v343_v44 = vand.u32 4294901760, %v342_v36  ;;  %v4053_v45 = vsub.f32 %v61_v33, %v4036_v37  ;;  %v35_v57 = vmul.f32 %v19_v47, %v19_v47  ;;  %v23_v47 = vld [vmem:[%s5119_s0 + $0x48] sm:$0xff] }
   0xb   :  { %3488 = vmatpush3.bf16.msra.mxu0 %v3994_v17  ;;  %v180_v40 = vand.u32 4294901760, %v4026_v31  ;;  %v190_v43 = vand.u32 4294901760, %v4031_v35  ;;  %v4055_v46 = vand.u32 4294901760, %v64_v42  ;;  %v350_v49 = vand.u32 4294901760, %v349_v41 }
   0xc   :  { %3490 = vmatprep.subr.bf16.mxu0 %v4017_v27  ;;  %v200_v52 = vand.u32 4294901760, %v4053_v45  ;;  %v67_v56 = vsel %vm53_vm0, %v34_v50, 0  ;;  %v70_v62 = vsel %vm53_vm0, %v35_v57, 0  ;;  %v4092_v4 = vsub.f32 %v3958_v2, %v113_v6  ;;  %v21_v2 = vld [vmem:[%s5119_s0 + $0x38] sm:$0xff] }
   0xd   :  { %v181_v48 = vsub.f32 %v4026_v31, %v180_v40  ;;  %v191_v51 = vsub.f32 %v4031_v35, %v190_v43  ;;  %v4068_v53 = vsub.f32 %v64_v42, %v4055_v46  ;;  %v3493_v55 = vpack.c.bf16 %v350_v49, %v343_v44 }
   0xe   :  { %v201_v59 = vsub.f32 %v4053_v45, %v200_v52  ;;  %v4077_v61 = vand.u32 4294901760, %v67_v56  ;;  %v4086_v3 = vand.u32 4294901760, %v70_v62  ;;  %v4097_v10 = vsub.f32 %v3963_v5, %v116_v9 }
   0xf   :  { %3492 = vmatpush3.bf16.msra.mxu0 %v4017_v27  ;;  %v182_v54 = vand.u32 4294901760, %v181_v48  ;;  %v192_v58 = vand.u32 4294901760, %v191_v51  ;;  %v5130_v60 = vand.u32 4294901760, %v4068_v53  ;;  %v355_v5 = vand.u32 4294901760, %v4092_v4 }
  0x10   :  { %3097 = vmatprep.subr.mxu0 %v4043_v39  ;;  %v202_v63 = vand.u32 4294901760, %v201_v59  ;;  %v4084_v1 = vsub.f32 %v67_v56, %v4077_v61  ;;  %v4104_v18 = vsub.f32 %v70_v62, %v4086_v3  ;;  %v362_v6 = vand.u32 4294901760, %v4097_v10 }
  0x11   :  { %3099 = vmatprep.mubr.f32.mxu0 %v182_v54  ;;  %v211_v0 = vsub.f32 %v4068_v53, %v5130_v60  ;;  %v36_v20 = vmul.f32 %v20_v14, %v20_v14  ;;  %v356_v22 = vsub.f32 %v4092_v4, %v355_v5  ;;  %v37_v26 = vmul.f32 %v21_v2, %v21_v2 }
  0x12   :  { %v5129_v16 = vand.u32 4294901760, %v4084_v1  ;;  %v5128_v19 = vand.u32 4294901760, %v4104_v18  ;;  %v363_v24 = vsub.f32 %v4097_v10, %v362_v6  ;;  %v39_v56 = vmul.f32 %v23_v47, %v23_v47 }
  0x13   :  { %3098 = vmatpush3.msra.mxu0 %v4043_v39  ;;  %v212_v15 = vand.u32 4294901760, %v211_v0  ;;  %v73_v36 = vsel %vm53_vm0, %v36_v20, 0  ;;  %v357_v41 = vand.u32 4294901760, %v356_v22  ;;  %v76_v49 = vsel %vm53_vm0, %v37_v26, 0  ;;  %v25_v22 = vld [vmem:[%s5119_s0 + $0x58] sm:$0xff] }
  0x14   :  { %3100 = vmatmul.mubr.f32.vlgmr.msra.gmra.mrb[0].mxu0 %v192_v58  ;;  %3494 = vmatprep.subr.bf16.mxu0 %v3493_v55  ;;  %v221_v9 = vsub.f32 %v4084_v1, %v5129_v16  ;;  %v231_v34 = vsub.f32 %v4104_v18, %v5128_v19  ;;  %v364_v42 = vand.u32 4294901760, %v363_v24  ;;  %v4128_v44 = vand.u32 4294901760, %v73_v36 }
  0x15   :  { %3496 = vmatpush3.bf16.msra.mxu0 %v3493_v55  ;;  %3102 = vmatprep.mubr.f32.mxu0 %v202_v63  ;;  %v4137_v54 = vand.u32 4294901760, %v76_v49  ;;  %v38_v55 = vmul.f32 %v22_v38, %v22_v38  ;;  %v82_v63 = vsel %vm53_vm0, %v39_v56, 0  ;;  %v4162_v20 = vsub.f32 %v3969_v7, %v119_v12 }
  0x16   :  { %v222_v33 = vand.u32 4294901760, %v221_v9  ;;  %v232_v48 = vand.u32 4294901760, %v231_v34  ;;  %v3497_v50 = vpack.c.bf16 %v364_v42, %v357_v41  ;;  %v4135_v51 = vsub.f32 %v73_v36, %v4128_v44 }
  0x17   :  { %v4141_v58 = vsub.f32 %v76_v49, %v4137_v54  ;;  %v79_v59 = vsel %vm53_vm0, %v38_v55, 0  ;;  %v4157_v9 = vand.u32 4294901760, %v82_v63  ;;  %v369_v7 = vand.u32 4294901760, %v4162_v20  ;;  %v26_v55 = vld [vmem:[%s5119_s0 + $0x60] sm:$0xff] }
  0x18   :  { %3103 = vmatmul.mubr.f32.gmra.mrb[2].mxu0 %v212_v15  ;;  %3498 = vmatprep.subr.bf16.mxu0 %v3497_v50  ;;  %v5127_v57 = vand.u32 4294901760, %v4135_v51  ;;  %v4144_v62 = vand.u32 4294901760, %v79_v59  ;;  %v24_v15 = vld [vmem:[%s5119_s0 + $0x50] sm:$0xff]  ;;  %v41_v42 = vmul.f32 %v25_v22, %v25_v22 }
  0x19   :  { %3105 = vmatprep.mubr.f32.mxu0 %v222_v33  ;;  %3500 = vmatpush3.bf16.msra.mxu0 %v3497_v50  ;;  %v5124_v14 = vand.u32 4294901760, %v4141_v58  ;;  %v4173_v33 = vsub.f32 %v3974_v8, %v122_v13  ;;  %v4177_v36 = vsub.f32 %v82_v63, %v4157_v9  ;;  %v40_v12 = vmul.f32 %v24_v15, %v24_v15 }
  0x1a   :  { %v241_v0 = vsub.f32 %v4135_v51, %v5127_v57  ;;  %v4155_v2 = vsub.f32 %v79_v59, %v4144_v62  ;;  %v370_v13 = vsub.f32 %v4162_v20, %v369_v7  ;;  %v88_v50 = vsel %vm53_vm0, %v41_v42, 0 }
  0x1b   :  { %v251_v26 = vsub.f32 %v4141_v58, %v5124_v14  ;;  %v376_v41 = vand.u32 4294901760, %v4173_v33  ;;  %v5122_v8 = vand.u32 4294901760, %v4177_v36  ;;  %v85_v49 = vsel %vm53_vm0, %v40_v12, 0 }
  0x1c   :  { %3106 = vmatmul.mubr.f32.gmra.mrb[4].mxu0 %v232_v48  ;;  %v242_v24 = vand.u32 4294901760, %v241_v0  ;;  %v5123_v34 = vand.u32 4294901760, %v4155_v2  ;;  %v371_v63 = vand.u32 4294901760, %v370_v13  ;;  %v4199_v15 = vand.u32 4294901760, %v85_v49 }
  0x1d   :  { %v252_v38 = vand.u32 4294901760, %v251_v26  ;;  %v377_v48 = vsub.f32 %v4173_v33, %v376_v41  ;;  %v271_v59 = vsub.f32 %v4177_v36, %v5122_v8  ;;  %v4201_v22 = vand.u32 4294901760, %v88_v50 }
  0x1e   :  { %3108 = vmatprep.mubr.f32.mxu0 %v242_v24  ;;  %v261_v47 = vsub.f32 %v4155_v2, %v5123_v34  ;;  %v27_v24 = vld [vmem:[%s5119_s0 + $0x68] sm:$0xff]  ;;  %v42_v12 = vmul.f32 %v26_v55, %v26_v55  ;;  %v4207_v42 = vsub.f32 %v85_v49, %v4199_v15  ;;  %v28_v55 = vld [vmem:[%s5119_s0 + $0x70] sm:$0xff] }
  0x1f   :  { %v378_v0 = vand.u32 4294901760, %v377_v48  ;;  %v272_v26 = vand.u32 4294901760, %v271_v59  ;;  %v43_v48 = vmul.f32 %v27_v24, %v27_v24 }
  0x20   :  { %3109 = vmatmul.mubr.f32.gmra.mrb[6].mxu0 %v252_v38  ;;  %v262_v56 = vand.u32 4294901760, %v261_v47  ;;  %v4210_v47 = vsub.f32 %v88_v50, %v4201_v22  ;;  %v91_v13 = vsel %vm53_vm0, %v42_v12, 0  ;;  %v5125_v8 = vand.u32 4294901760, %v4207_v42 }
  0x21   :  { %v3501_v38 = vpack.c.bf16 %v378_v0, %v371_v63  ;;  %v4215_v14 = vand.u32 4294901760, %v91_v13  ;;  %v94_v49 = vsel %vm53_vm0, %v43_v48, 0  ;;  %v382_v50 = vsub.f32 %v4020_v28, %v4043_v39  ;;  %v29_v28 = vld [vmem:[%s5119_s0 + $0x78] sm:$0xff] }
  0x22   :  { %3111 = vmatprep.mubr.f32.mxu0 %v262_v56  ;;  %v5126_v34 = vand.u32 4294901760, %v4210_v47  ;;  %v281_v56 = vsub.f32 %v4207_v42, %v5125_v8  ;;  %v4232_v0 = vand.u32 4294901760, %v94_v49  ;;  %v45_v19 = vmul.f32 %v29_v28, %v29_v28 }
  0x23   :  { %3502 = vmatprep.subr.bf16.mxu0 %v3501_v38  ;;  %v4230_v63 = vsub.f32 %v91_v13, %v4215_v14  ;;  %v4234_v24 = vand.u32 4294901760, %v382_v50  ;;  %v3505_v28 = vpack.c.bf16 %v4010_v25, %v4001_v21 }
  0x24   :  { %3112 = vmatmul.mubr.f32.gmra.mrb[8].mxu0 %v272_v26  ;;  %v291_v59 = vsub.f32 %v4210_v47, %v5126_v34  ;;  %v44_v26 = vmul.f32 %v28_v55, %v28_v55  ;;  %v282_v12 = vand.u32 4294901760, %v281_v56  ;;  %v4241_v8 = vsub.f32 %v94_v49, %v4232_v0 }
  0x25   :  { %3504 = vmatpush3.bf16.msra.mxu0 %v3501_v38  ;;  %v300_v48 = vand.u32 4294901760, %v4230_v63  ;;  %v384_v34 = vsub.f32 %v382_v50, %v4234_v24  ;;  %v100_v60 = vsel %vm53_vm0, %v45_v19, 0  ;;  %v3529_v19 = vpack.c.bf16 %v348_v32, %v341_v30 }
  0x26   :  { %v292_v38 = vand.u32 4294901760, %v291_v59  ;;  %v97_v13 = vsel %vm53_vm0, %v44_v26, 0  ;;  %3114 = vmatprep.mubr.f32.mxu0 %v282_v12  ;;  %v310_v56 = vand.u32 4294901760, %v4241_v8  ;;  %v4258_v12 = vand.u32 4294901760, %v100_v60 }
  0x27   :  { %v301_v55 = vsub.f32 %v4230_v63, %v300_v48  ;;  %v4248_v57 = vand.u32 4294901760, %v97_v13  ;;  %v385_v59 = vand.u32 4294901760, %v384_v34 }
  0x28   :  { %3115 = vmatmul.mubr.f32.gmra.mrb[10].mxu0 %v292_v38  ;;  %v311_v26 = vsub.f32 %v4241_v8, %v310_v56 }
  0x29   :  { %v302_v16 = vand.u32 4294901760, %v301_v55  ;;  %v4252_v49 = vsub.f32 %v97_v13, %v4248_v57  ;;  %3135 = vmatprep.subr.mxu0 %v385_v59  ;;  %v4264_v13 = vsub.f32 %v100_v60, %v4258_v12  ;;  %v4274_v55 = vpack.c.bf16 %v362_v6, %v355_v5 }
  0x2a   :  { %3136 = vmatpush3.msra.mxu0 %v385_v59  ;;  %v312_v38 = vand.u32 4294901760, %v311_v26  ;;  %v4283_v60 = vpack.c.bf16 %v376_v41, %v369_v7  ;;  %v3509_v5 = vpack.c.bf16 %v4097_v10, %v4092_v4  ;;  %v3513_v6 = vpack.c.bf16 %v4173_v33, %v4162_v20 }
  0x2b   :  { %3117 = vmatprep.mubr.f32.mxu0 %v302_v16  ;;  %v320_v34 = vand.u32 4294901760, %v4252_v49  ;;  %3506 = vmatprep.subr.bf16.mxu0 %v3505_v28  ;;  %v330_v21 = vand.u32 4294901760, %v4264_v13  ;;  %v5131_v4 = vand.u32 4294901760, %v4068_v53  ;;  %v5132_v10 = vand.u32 4294901760, %v4084_v1 }
  0x2c   :  { %3118 = vmatmul.mubr.f32.gmra.mrb[12].mxu0 %v312_v38 }
  0x2d   :  { %v321_v16 = vsub.f32 %v4252_v49, %v320_v34  ;;  %v331_v30 = vsub.f32 %v4264_v13, %v330_v21 }
  0x2f   :  { %v322_v25 = vand.u32 4294901760, %v321_v16  ;;  %v332_v32 = vand.u32 4294901760, %v331_v30 }
  0x31   :  { %3120 = vmatprep.mubr.f32.mxu0 %v322_v25 }
  0x32   :  { %3121 = vmatmul.mubr.f32.gmra.mrb[14].mxu0 %v332_v32 }
  0x33   :  { %3137 = vmatprep.mubr.f32.mxu0 %v4007_v23 }
  0x36   :  { %3138 = vmatmul.mubr.f32.vlgmr.msra.gmra.mrb[0].mxu0 %v4022_v29 }
  0x37   :  { %3508 = vmatpush3.bf16.msra.mxu0 %v3505_v28  ;;  %3140 = vmatprep.mubr.f32.mxu0 %v4036_v37 }
  0x38   :  { %3510 = vmatprep.subr.bf16.mxu0 %v3509_v5 }
  0x3a   :  { %3141 = vmatmul.mubr.f32.gmra.mrb[2].mxu0 %v4055_v46 }
  0x3b   :  { %3143 = vmatprep.mubr.f32.mxu0 %v4077_v61  ;;  %3512 = vmatpush3.bf16.msra.mxu0 %v3509_v5 }
  0x3c   :  { %3514 = vmatprep.subr.bf16.mxu0 %v3513_v6 }
  0x3e   :  { %3144 = vmatmul.mubr.f32.gmra.mrb[4].mxu0 %v4086_v3 }
  0x3f   :  { %3146 = vmatprep.mubr.f32.mxu0 %v4128_v44  ;;  %3516 = vmatpush3.bf16.msra.mxu0 %v3513_v6 }
  0x40   :  { %3173 = vmatprep.subr.mxu0 %v382_v50 }
  0x42   :  { %3147 = vmatmul.mubr.f32.gmra.mrb[6].mxu0 %v4137_v54 }
  0x43   :  { %3149 = vmatprep.mubr.f32.mxu0 %v4144_v62  ;;  %3174 = vmatpush3.msra.mxu0 %v382_v50 }
  0x44   :  { %3518 = vmatprep.subr.bf16.mxu0 %v3980_v11 }
  0x46   :  { %3150 = vmatmul.mubr.f32.gmra.mrb[8].mxu0 %v4157_v9 }
  0x47   :  { %3152 = vmatprep.mubr.f32.mxu0 %v4199_v15 }
  0x4a   :  { %3153 = vmatmul.mubr.f32.gmra.mrb[10].mxu0 %v4201_v22 }
  0x4b   :  { %3155 = vmatprep.mubr.f32.mxu0 %v4215_v14 }
  0x4e   :  { %3156 = vmatmul.mubr.f32.gmra.mrb[12].mxu0 %v4232_v0 }
  0x4f   :  { %3158 = vmatprep.mubr.f32.mxu0 %v4248_v57 }
  0x52   :  { %3159 = vmatmul.mubr.f32.gmra.mrb[14].mxu0 %v4258_v12 }
  0x53   :  { %3175 = vmatprep.mubr.f32.mxu0 %v4026_v31  ;;  %v5133_v31 = vand.u32 4294901760, %v4104_v18 }
  0x56   :  { %3176 = vmatmul.mubr.f32.vlgmr.msra.gmra.mrb[0].mxu0 %v4031_v35  ;;  %v5134_v35 = vand.u32 4294901760, %v4135_v51 }
  0x57   :  { %3520 = vmatpush3.bf16.msra.mxu0 %v3980_v11  ;;  %3178 = vmatprep.mubr.f32.mxu0 %v4053_v45  ;;  %v5137_v45 = vand.u32 4294901760, %v4177_v36 }
  0x58   :  { %3522 = vmatprep.subr.bf16.mxu0 %v3994_v17 }
  0x5a   :  { %3179 = vmatmul.mubr.f32.gmra.mrb[2].mxu0 %v4068_v53  ;;  %v5139_v53 = vand.u32 4294901760, %v4210_v47 }
  0x5b   :  { %3181 = vmatprep.mubr.f32.mxu0 %v4084_v1  ;;  %3524 = vmatpush3.bf16.msra.mxu0 %v3994_v17 }
  0x5c   :  { %3526 = vmatprep.subr.bf16.mxu0 %v4017_v27 }
  0x5e   :  { %3182 = vmatmul.mubr.f32.gmra.mrb[4].mxu0 %v4104_v18 }
  0x5f   :  { %3184 = vmatprep.mubr.f32.mxu0 %v4135_v51  ;;  %3528 = vmatpush3.bf16.msra.mxu0 %v4017_v27 }
  0x60   :  { %3211 = vmatprep.subr.mxu0 %v4043_v39 }
  0x62   :  { %3185 = vmatmul.mubr.f32.gmra.mrb[6].mxu0 %v4141_v58 }
  0x63   :  { %3187 = vmatprep.mubr.f32.mxu0 %v4155_v2  ;;  %3212 = vmatpush3.msra.mxu0 %v4043_v39 }
  0x64   :  { %3530 = vmatprep.subr.bf16.mxu0 %v3529_v19 }
  0x66   :  { %3188 = vmatmul.mubr.f32.gmra.mrb[8].mxu0 %v4177_v36 }
  0x67   :  { %3190 = vmatprep.mubr.f32.mxu0 %v4207_v42 }
  0x6a   :  { %3191 = vmatmul.mubr.f32.gmra.mrb[10].mxu0 %v4210_v47 }
  0x6b   :  { %3193 = vmatprep.mubr.f32.mxu0 %v4230_v63 }
  0x6e   :  { %3194 = vmatmul.mubr.f32.gmra.mrb[12].mxu0 %v4241_v8 }
  0x6f   :  { %3196 = vmatprep.mubr.f32.mxu0 %v4252_v49 }
  0x72   :  { %3197 = vmatmul.mubr.f32.gmra.mrb[14].mxu0 %v4264_v13 }
  0x73   :  { %3213 = vmatprep.mubr.f32.mxu0 %v180_v40  ;;  %v5135_v40 = vand.u32 4294901760, %v4141_v58 }
  0x76   :  { %3214 = vmatmul.mubr.f32.vlgmr.msra.gmra.mrb[0].mxu0 %v190_v43  ;;  %v5136_v43 = vand.u32 4294901760, %v4155_v2 }
  0x77   :  { %3532 = vmatpush3.bf16.msra.mxu0 %v3529_v19  ;;  %3216 = vmatprep.mubr.f32.mxu0 %v200_v52  ;;  %v5138_v52 = vand.u32 4294901760, %v4207_v42 }
  0x78   :  { %3534 = vmatprep.subr.bf16.mxu0 %v4274_v55 }
  0x7a   :  { %3217 = vmatmul.mubr.f32.gmra.mrb[2].mxu0 %v5131_v4 }
  0x7b   :  { %3219 = vmatprep.mubr.f32.mxu0 %v5132_v10  ;;  %3536 = vmatpush3.bf16.msra.mxu0 %v4274_v55 }
  0x7c   :  { %3538 = vmatprep.subr.bf16.mxu0 %v4283_v60 }
  0x7e   :  { %3220 = vmatmul.mubr.f32.gmra.mrb[4].mxu0 %v5133_v31 }
  0x7f   :  { %3222 = vmatprep.mubr.f32.mxu0 %v5134_v35  ;;  %3540 = vmatpush3.bf16.msra.mxu0 %v4283_v60 }
  0x80   :  { %3249 = vmatprep.subr.mxu0 %v4234_v24 }
  0x82   :  { %3223 = vmatmul.mubr.f32.gmra.mrb[6].mxu0 %v5135_v40 }
  0x83   :  { %3225 = vmatprep.mubr.f32.mxu0 %v5136_v43  ;;  %3250 = vmatpush3.msra.mxu0 %v4234_v24 }
  0x84   :  { %3542 = vmatprep.subr.bf16.mxu0 %v3980_v11 }
  0x86   :  { %3226 = vmatmul.mubr.f32.gmra.mrb[8].mxu0 %v5137_v45 }
  0x87   :  { %3228 = vmatprep.mubr.f32.mxu0 %v5138_v52 }
  0x8a   :  { %3229 = vmatmul.mubr.f32.gmra.mrb[10].mxu0 %v5139_v53 }
  0x8b   :  { %3231 = vmatprep.mubr.f32.mxu0 %v300_v48 }
  0x8e   :  { %3232 = vmatmul.mubr.f32.gmra.mrb[12].mxu0 %v310_v56 }
  0x8f   :  { %3234 = vmatprep.mubr.f32.mxu0 %v320_v34 }
  0x92   :  { %3235 = vmatmul.mubr.f32.gmra.mrb[14].mxu0 %v330_v21 }
  0x93   :  { %3251 = vmatprep.mubr.f32.mxu0 %v4007_v23 }
  0x96   :  { %3252 = vmatmul.mubr.f32.vlgmr.msra.gmra.mrb[0].mxu0 %v4022_v29 }
  0x97   :  { %3544 = vmatpush3.bf16.msra.mxu0 %v3980_v11  ;;  %3254 = vmatprep.mubr.f32.mxu0 %v4036_v37  ;;  %v1484_v11 = vld [vmem:[%s5120_s2 + $0x8] sm:$0xf] }
  0x98   :  { %3546 = vmatprep.subr.bf16.mxu0 %v3994_v17 }
  0x9a   :  { %3255 = vmatmul.mubr.f32.gmra.mrb[2].mxu0 %v4055_v46 }
  0x9b   :  { %3257 = vmatprep.mubr.f32.mxu0 %v4077_v61  ;;  %3548 = vmatpush3.bf16.msra.mxu0 %v3994_v17  ;;  %v1483_v17 = vld [vmem:[%s5120_s2] sm:$0xff] }
  0x9c   :  { %3550 = vmatprep.subr.bf16.mxu0 %v4017_v27 }
  0x9e   :  { %3258 = vmatmul.mubr.f32.gmra.mrb[4].mxu0 %v4086_v3 }
  0x9f   :  { %3260 = vmatprep.mubr.f32.mxu0 %v4128_v44  ;;  %3552 = vmatpush3.bf16.msra.mxu0 %v4017_v27  ;;  %v1538_v27 = vand.u32 4294901760, %v1483_v17 }
  0xa0   :  { %3287 = vmatprep.subr.mxu0 %v4043_v39 }
  0xa2   :  { %3261 = vmatmul.mubr.f32.gmra.mrb[6].mxu0 %v4137_v54 }
  0xa3   :  { %3263 = vmatprep.mubr.f32.mxu0 %v4144_v62  ;;  %3288 = vmatpush3.msra.mxu0 %v4043_v39  ;;  %v4422_v39 = vsub.f32 %v1483_v17, %v1538_v27 }
  0xa6   :  { %3264 = vmatmul.mubr.f32.gmra.mrb[8].mxu0 %v4157_v9 }
  0xa7   :  { %3266 = vmatprep.mubr.f32.mxu0 %v4199_v15 }
  0xaa   :  { %3267 = vmatmul.mubr.f32.gmra.mrb[10].mxu0 %v4201_v22 }
  0xab   :  { %3269 = vmatprep.mubr.f32.mxu0 %v4215_v14 }
  0xae   :  { %3270 = vmatmul.mubr.f32.gmra.mrb[12].mxu0 %v4232_v0 }
  0xaf   :  { %3272 = vmatprep.mubr.f32.mxu0 %v4248_v57 }
  0xb2   :  { %3273 = vmatmul.mubr.f32.gmra.mrb[14].mxu0 %v4258_v12 }
  0xb3   :  { %3289 = vmatprep.mubr.f32.mxu0 %v4007_v23  ;;  %v1535_v23 = vsel %vm102_vm1, %v1484_v11, 0 }
  0xb6   :  { %3290 = vmatmul.mubr.f32.vlgmr.msra.gmra.mrb[0].mxu0 %v4022_v29  ;;  %v1541_v29 = vand.u32 4294901760, %v1535_v23 }
  0xb7   :  { %3292 = vmatprep.mubr.f32.mxu0 %v4036_v37 }
  0xb8   :  { %v4418_v37 = vpack.c.bf16 %v1541_v29, %v1538_v27 }
  0xba   :  { %3293 = vmatmul.mubr.f32.gmra.mrb[2].mxu0 %v4055_v46  ;;  %3554 = vmatprep.subr.bf16.mxu1 %v4418_v37  ;;  %v4424_v46 = vsub.f32 %v1535_v23, %v1541_v29 }
  0xbb   :  { %3295 = vmatprep.mubr.f32.mxu0 %v4077_v61  ;;  %3556 = vmatpush3.bf16.msra.mxu1 %v4418_v37  ;;  %v1767_v61 = vand.u32 4294901760, %v4422_v39 }
  0xbc   :  { %v1774_v1 = vand.u32 4294901760, %v4424_v46 }
  0xbe   :  { %3296 = vmatmul.mubr.f32.gmra.mrb[4].mxu0 %v4086_v3  ;;  %v1768_v3 = vsub.f32 %v4422_v39, %v1767_v61  ;;  %v1775_v18 = vsub.f32 %v4424_v46, %v1774_v1 }
  0xbf   :  { %3298 = vmatprep.mubr.f32.mxu0 %v4128_v44 }
  0xc0   :  { %v1769_v44 = vand.u32 4294901760, %v1768_v3  ;;  %v1776_v51 = vand.u32 4294901760, %v1775_v18 }
  0xc2   :  { %3299 = vmatmul.mubr.f32.gmra.mrb[6].mxu0 %v4137_v54  ;;  %v4434_v54 = vpack.c.bf16 %v1776_v51, %v1769_v44 }
  0xc3   :  { %3301 = vmatprep.mubr.f32.mxu0 %v4144_v62 }
  0xc4   :  { %3558 = vmatprep.subr.bf16.mxu1 %v4434_v54 }
  0xc6   :  { %3302 = vmatmul.mubr.f32.gmra.mrb[8].mxu0 %v4157_v9 }
  0xc7   :  { %3304 = vmatprep.mubr.f32.mxu0 %v4199_v15 }
  0xca   :  { %3305 = vmatmul.mubr.f32.gmra.mrb[10].mxu0 %v4201_v22 }
  0xcb   :  { %3307 = vmatprep.mubr.f32.mxu0 %v4215_v14 }
  0xce   :  { %3308 = vmatmul.mubr.f32.gmra.mrb[12].mxu0 %v4232_v0 }
  0xcf   :  { %3310 = vmatprep.mubr.f32.mxu0 %v4248_v57  ;;  %v4439_v57 = vpack.c.bf16 %v4424_v46, %v4422_v39  ;;  %v4871_v46 = vld [vmem:[%s5119_s0 + $0x8] sm:$0xff] }
  0xd2   :  { %3311 = vmatmul.mubr.f32.gmra.mrb[14].mxu0 %v4258_v12 }
 0x189   :  { %v3291_v58 = vpop.f32.mrb[0].mxu0 }
 0x18a   :  { %v3577_v62 = vadd.f32 1e-08, %v3291_v58  ;;  %v1181_v14 = vpop.f32.mrb[1].mxu0 }
 0x18b   :  { %v4441_v2 = vadd.f32 1e-08, %v1181_v14 }
 0x18c   :  { %3753 = vrsqrt.f32 %v3577_v62  ;;  %vm1284_vm2 = vcmp.eq.f32.partialorder %v3577_v62, inf  ;;  %vm1286_vm3 = vcmp.eq.f32.partialorder %v3577_v62, 0.0  ;;  %v1287_v47 = vand.u32 2147483648, %v3577_v62 }
 0x18d   :  { %3755 = vrsqrt.f32 %v4441_v2  ;;  %v3294_v9 = vpop.f32.mrb[2].mxu0  ;;  %vm1277_vm4 = vcmp.eq.f32.partialorder %v4441_v2, inf  ;;  %v1280_v48 = vand.u32 2147483648, %v4441_v2  ;;  %vm1279_vm6 = vcmp.eq.f32.partialorder %v4441_v2, 0.0 }
 0x18e   :  { %v3579_v20 = vadd.f32 1e-08, %v3294_v9  ;;  %v1193_v33 = vpop.f32.mrb[3].mxu0 }
 0x18f   :  { %v3580_v36 = vadd.f32 1e-08, %v1193_v33 }
 0x190   :  { %3757 = vrsqrt.f32 %v3579_v20  ;;  %vm1298_vm5 = vcmp.eq.f32.partialorder %v3579_v20, inf  ;;  %vm1300_vm7 = vcmp.eq.f32.partialorder %v3579_v20, 0.0  ;;  %v1301_v59 = vand.u32 2147483648, %v3579_v20 }
 0x191   :  { %3759 = vrsqrt.f32 %v3580_v36  ;;  %v3297_v7 = vpop.f32.mrb[4].mxu0  ;;  %vm1291_vm8 = vcmp.eq.f32.partialorder %v3580_v36, inf  ;;  %vm1293_vm9 = vcmp.eq.f32.partialorder %v3580_v36, 0.0  ;;  %v1294_v26 = vand.u32 2147483648, %v3580_v36 }
 0x192   :  { %v4444_v41 = vadd.f32 1e-08, %v3297_v7  ;;  %v1205_v8 = vpop.f32.mrb[5].mxu0 }
 0x193   :  { %v4446_v15 = vadd.f32 1e-08, %v1205_v8 }
 0x194   :  { %3761 = vrsqrt.f32 %v4444_v41  ;;  %vm1312_vm10 = vcmp.eq.f32.partialorder %v4444_v41, inf  ;;  %vm1314_vm11 = vcmp.eq.f32.partialorder %v4444_v41, 0.0  ;;  %v1315_v16 = vand.u32 2147483648, %v4444_v41 }
 0x195   :  { %3763 = vrsqrt.f32 %v4446_v15  ;;  %v3300_v22 = vpop.f32.mrb[6].mxu0  ;;  %vm1305_vm12 = vcmp.eq.f32.partialorder %v4446_v15, inf  ;;  %vm1307_vm13 = vcmp.eq.f32.partialorder %v4446_v15, 0.0  ;;  %v1308_v25 = vand.u32 2147483648, %v4446_v15 }
 0x196   :  { %v3754_v42 = vpop.eup %3753  ;;  %v4451_v50 = vadd.f32 1e-08, %v3300_v22  ;;  %v1217_v63 = vpop.f32.mrb[7].mxu0 }
 0x197   :  { %v3756_v0 = vpop.eup %3755  ;;  %v1283_v24 = vmul.f32 %v3754_v42, %v3577_v62  ;;  %v4454_v56 = vadd.f32 1e-08, %v1217_v63 }
 0x198   :  { %3765 = vrsqrt.f32 %v4451_v50  ;;  %v1276_v38 = vmul.f32 %v3756_v0, %v4441_v2  ;;  %vm1326_vm14 = vcmp.eq.f32.partialorder %v4451_v50, inf  ;;  %vm1328_vm15 = vcmp.eq.f32.partialorder %v4451_v50, 0.0 }
 0x199   :  { %v1285_v49 = vsel %vm1284_vm2, %v3577_v62, %v1283_v24  ;;  %3767 = vrsqrt.f32 %v4454_v56  ;;  %v3303_v12 = vpop.f32.mrb[8].mxu0  ;;  %v1329_v23 = vand.u32 2147483648, %v4451_v50  ;;  %vm1319_vm0 = vcmp.eq.f32.partialorder %v4454_v56, inf }
 0x19a   :  { %v3758_v28 = vpop.eup %3757  ;;  %v1288_v34 = vsel %vm1286_vm3, %v1287_v47, %v1285_v49  ;;  %v1229_v13 = vpop.f32.mrb[9].mxu0  ;;  %v4466_v60 = vadd.f32 1e-08, %v3303_v12  ;;  %v1278_v10 = vsel %vm1277_vm4, %v4441_v2, %v1276_v38  ;;  %vm1321_vm1 = vcmp.eq.f32.partialorder %v4454_v56, 0.0 }
 0x19b   :  { %v3760_v19 = vpop.eup %3759  ;;  %v1297_v55 = vmul.f32 %v3758_v28, %v3579_v20  ;;  %v4470_v30 = vadd.f32 1e-08, %v1229_v13  ;;  %v2808_v32 = vmul.f32 -1.442695, %v1288_v34  ;;  %v1281_v27 = vsel %vm1279_vm6, %v1280_v48, %v1278_v10 }
 0x19c   :  { %v1290_v21 = vmul.f32 %v3760_v19, %v3580_v36  ;;  %3769 = vrsqrt.f32 %v4466_v60  ;;  %v1322_v22 = vand.u32 2147483648, %v4454_v56  ;;  %vm1340_vm2 = vcmp.eq.f32.partialorder %v4466_v60, inf }
 0x19d   :  { %v1299_v5 = vsel %vm1298_vm5, %v3579_v20, %v1297_v55  ;;  %v3306_v6 = vpop.f32.mrb[10].mxu0  ;;  %3771 = vrsqrt.f32 %v4470_v30  ;;  %vm1342_vm3 = vcmp.eq.f32.partialorder %v4466_v60, 0.0  ;;  %v1343_v12 = vand.u32 2147483648, %v4466_v60 }
 0x19e   :  { %v3762_v4 = vpop.eup %3761  ;;  %v1302_v31 = vsel %vm1300_vm7, %v1301_v59, %v1299_v5  ;;  %v1292_v35 = vsel %vm1291_vm8, %v3580_v36, %v1290_v21  ;;  %v1241_v40 = vpop.f32.mrb[11].mxu0  ;;  %3773 = vpow2.f32 %v2808_v32  ;;  %v4492_v3 = vadd.f32 1e-08, %v3306_v6 }
 0x19f   :  { %v3764_v43 = vpop.eup %3763  ;;  %v2810_v45 = vmul.f32 -1.442695, %v1302_v31  ;;  %v1295_v52 = vsel %vm1293_vm9, %v1294_v26, %v1292_v35  ;;  %v1311_v53 = vmul.f32 %v3762_v4, %v4444_v41  ;;  %v4499_v62 = vadd.f32 1e-08, %v1241_v40 }
 0x1a0   :  { %v2809_v11 = vmul.f32 -1.442695, %v1295_v52  ;;  %v1304_v17 = vmul.f32 %v3764_v43, %v4446_v15  ;;  %vm1333_vm4 = vcmp.eq.f32.partialorder %v4470_v30, inf  ;;  %vm1335_vm5 = vcmp.eq.f32.partialorder %v4470_v30, 0.0 }
 0x1a1   :  { %v1313_v29 = vsel %vm1312_vm10, %v4444_v41, %v1311_v53  ;;  %v3309_v18 = vpop.f32.mrb[12].mxu0  ;;  %3775 = vpow2.f32 %v2810_v45  ;;  %v2807_v41 = vmul.f32 -1.442695, %v1281_v27  ;;  %v1336_v19 = vand.u32 2147483648, %v4470_v30 }
 0x1a2   :  { %v3766_v44 = vpop.eup %3765  ;;  %v1316_v51 = vsel %vm1314_vm11, %v1315_v16, %v1313_v29  ;;  %v1306_v58 = vsel %vm1305_vm12, %v4446_v15, %v1304_v17  ;;  %v1253_v14 = vpop.f32.mrb[13].mxu0  ;;  %3777 = vrsqrt.f32 %v4492_v3  ;;  %v4519_v49 = vadd.f32 1e-08, %v3309_v18 }
 0x1a3   :  { %v3768_v2 = vpop.eup %3767  ;;  %v2812_v9 = vmul.f32 -1.442695, %v1316_v51  ;;  %v1309_v20 = vsel %vm1307_vm13, %v1308_v25, %v1306_v58  ;;  %v1325_v33 = vmul.f32 %v3766_v44, %v4451_v50  ;;  %3779 = vpow2.f32 %v2809_v11 }
 0x1a4   :  { %v2811_v36 = vmul.f32 -1.442695, %v1309_v20  ;;  %v1318_v7 = vmul.f32 %v3768_v2, %v4454_v56  ;;  %v4521_v26 = vadd.f32 1e-08, %v1253_v14  ;;  %vm1354_vm6 = vcmp.eq.f32.partialorder %v4492_v3, inf }
 0x1a5   :  { %3781 = vpow2.f32 %v2812_v9  ;;  %v1327_v8 = vsel %vm1326_vm14, %v4451_v50, %v1325_v33  ;;  %v3312_v15 = vpop.f32.mrb[14].mxu0  ;;  %vm1356_vm7 = vcmp.eq.f32.partialorder %v4492_v3, 0.0  ;;  %vm1347_vm8 = vcmp.eq.f32.partialorder %v4499_v62, inf }
 0x1a6   :  { %3783 = vpow2.f32 %v2811_v36  ;;  %v1330_v42 = vsel %vm1328_vm15, %v1329_v23, %v1327_v8  ;;  %v1320_v47 = vsel %vm1319_vm0, %v4454_v56, %v1318_v7  ;;  %v1265_v63 = vpop.f32.mrb[15].mxu0  ;;  %v3770_v48 = vpop.eup %3769  ;;  %v4525_v28 = vadd.f32 1e-08, %v3312_v15 }
 0x1a7   :  { %v2814_v0 = vmul.f32 -1.442695, %v1330_v42  ;;  %v1323_v24 = vsel %vm1321_vm1, %v1322_v22, %v1320_v47  ;;  %3785 = vrsqrt.f32 %v4499_v62  ;;  %v3772_v50 = vpop.eup %3771  ;;  %v1339_v56 = vmul.f32 %v3770_v48, %v4466_v60 }
 0x1a8   :  { %v2813_v59 = vmul.f32 -1.442695, %v1323_v24  ;;  %3787 = vpow2.f32 %v2807_v41  ;;  %v1332_v34 = vmul.f32 %v3772_v50, %v4470_v30  ;;  %v3774_v38 = vpop.eup %3773  ;;  %v4542_v6 = vadd.f32 1e-08, %v1265_v63 }
 0x1a9   :  { %3789 = vpow2.f32 %v2814_v0  ;;  %v1341_v13 = vsel %vm1340_vm2, %v4466_v60, %v1339_v56  ;;  %v1357_v60 = vand.u32 2147483648, %v4492_v3  ;;  %vm1349_vm9 = vcmp.eq.f32.partialorder %v4499_v62, 0.0 }
 0x1aa   :  { %3791 = vpow2.f32 %v2813_v59  ;;  %v1344_v16 = vsel %vm1342_vm3, %v1343_v12, %v1341_v13  ;;  %v1334_v21 = vsel %vm1333_vm4, %v4470_v30, %v1332_v34  ;;  %v1350_v35 = vand.u32 2147483648, %v4499_v62 }
 0x1ab   :  { %3793 = vrsqrt.f32 %v4519_v49  ;;  %v3776_v55 = vpop.eup %3775  ;;  %v2816_v32 = vmul.f32 -1.442695, %v1344_v16  ;;  %v1337_v5 = vsel %vm1335_vm5, %v1336_v19, %v1334_v21  ;;  %vm1368_vm10 = vcmp.eq.f32.partialorder %v4519_v49, inf }
 0x1ac   :  { %3795 = vrsqrt.f32 %v4521_v26  ;;  %v3778_v25 = vpop.eup %3777  ;;  %v2815_v10 = vmul.f32 -1.442695, %v1337_v5  ;;  %vm1370_vm11 = vcmp.eq.f32.partialorder %v4519_v49, 0.0  ;;  %v1436_v45 = vadd.f32 1.0, %v3774_v38 }
 0x1ad   :  { %3797 = vrsqrt.f32 %v4525_v28  ;;  %v3780_v4 = vpop.eup %3779  ;;  %v1353_v31 = vmul.f32 %v3778_v25, %v4492_v3  ;;  %v1371_v11 = vand.u32 2147483648, %v4519_v49  ;;  %vm1485_vm12 = vcmask 97280  }
 0x1ae   :  { %3799 = vpow2.f32 %v2816_v32  ;;  %v1437_v17 = vadd.f32 1.0, %v3780_v4  ;;  %v1438_v18 = vadd.f32 1.0, %v3776_v55  ;;  %vm1361_vm13 = vcmp.eq.f32.partialorder %v4521_v26, inf }
 0x1af   :  { %v3782_v30 = vpop.eup %3781  ;;  %3801 = vpow2.f32 %v2815_v10  ;;  %v1355_v43 = vsel %vm1354_vm6, %v4492_v3, %v1353_v31  ;;  %vm1363_vm14 = vcmp.eq.f32.partialorder %v4521_v26, 0.0  ;;  %v1364_v2 = vand.u32 2147483648, %v4521_v26 }
 0x1b0   :  { %v3784_v40 = vpop.eup %3783  ;;  %v1358_v53 = vsel %vm1356_vm7, %v1357_v60, %v1355_v43  ;;  %3803 = vrsqrt.f32 %v4542_v6  ;;  %vm1382_vm15 = vcmp.eq.f32.partialorder %v4525_v28, inf  ;;  %v1440_v33 = vadd.f32 1.0, %v3782_v30 }
 0x1b1   :  { %v3786_v52 = vpop.eup %3785  ;;  %v2818_v27 = vmul.f32 -1.442695, %v1358_v53  ;;  %3805 = vrcp.f32 %v1436_v45  ;;  %v1439_v58 = vadd.f32 1.0, %v3784_v40  ;;  %vm1384_vm0 = vcmp.eq.f32.partialorder %v4525_v28, 0.0 }
 0x1b2   :  { %v3788_v23 = vpop.eup %3787  ;;  %v1346_v29 = vmul.f32 %v3786_v52, %v4499_v62  ;;  %3807 = vrcp.f32 %v1437_v17  ;;  %v1385_v63 = vand.u32 2147483648, %v4525_v28  ;;  %vm1375_vm1 = vcmp.eq.f32.partialorder %v4542_v6, inf }
 0x1b3   :  { %v3790_v44 = vpop.eup %3789  ;;  %v1435_v51 = vadd.f32 1.0, %v3788_v23  ;;  %3809 = vpow2.f32 %v2818_v27  ;;  %vm1377_vm2 = vcmp.eq.f32.partialorder %v4542_v6, 0.0  ;;  %v1378_v25 = vand.u32 2147483648, %v4542_v6 }
 0x1b4   :  { %v3792_v3 = vpop.eup %3791  ;;  %v1348_v14 = vsel %vm1347_vm8, %v4499_v62, %v1346_v29  ;;  %v1442_v42 = vadd.f32 1.0, %v3790_v44  ;;  %vm2753_vm3 = vcmask 64512   ;;  %vm2786_vm4 = vcmask 425024  }
 0x1b5   :  { %v3794_v9 = vpop.eup %3793  ;;  %v1351_v20 = vsel %vm1349_vm9, %v1350_v35, %v1348_v14  ;;  %3811 = vrcp.f32 %v1435_v51  ;;  %v1441_v8 = vadd.f32 1.0, %v3792_v3 }
 0x1b6   :  { %v3796_v36 = vpop.eup %3795  ;;  %v2817_v7 = vmul.f32 -1.442695, %v1351_v20  ;;  %v1367_v41 = vmul.f32 %v3794_v9, %v4519_v49  ;;  %3813 = vrcp.f32 %v1438_v18 }
 0x1b7   :  { %v3798_v22 = vpop.eup %3797  ;;  %v1360_v15 = vmul.f32 %v3796_v36, %v4521_v26  ;;  %3815 = vrcp.f32 %v1439_v58 }
 0x1b8   :  { %3817 = vpow2.f32 %v2817_v7  ;;  %v1369_v62 = vsel %vm1368_vm10, %v4519_v49, %v1367_v41  ;;  %v1381_v47 = vmul.f32 %v3798_v22, %v4525_v28  ;;  %v3800_v0 = vpop.eup %3799 }
 0x1b9   :  { %v1372_v24 = vsel %vm1370_vm11, %v1371_v11, %v1369_v62  ;;  %v1362_v48 = vsel %vm1361_vm13, %v4521_v26, %v1360_v15  ;;  %3819 = vrcp.f32 %v1440_v33  ;;  %v3802_v59 = vpop.eup %3801  ;;  %v1444_v21 = vadd.f32 1.0, %v3800_v0 }
 0x1ba   :  { %v2820_v50 = vmul.f32 -1.442695, %v1372_v24  ;;  %v1365_v56 = vsel %vm1363_vm14, %v1364_v2, %v1362_v48  ;;  %v1383_v12 = vsel %vm1382_vm15, %v4525_v28, %v1381_v47  ;;  %3821 = vrcp.f32 %v1441_v8  ;;  %v3804_v34 = vpop.eup %3803 }
 0x1bb   :  { %v2819_v49 = vmul.f32 -1.442695, %v1365_v56  ;;  %v1386_v38 = vsel %vm1384_vm0, %v1385_v63, %v1383_v12  ;;  %3823 = vrcp.f32 %v1442_v42  ;;  %v1443_v13 = vadd.f32 1.0, %v3802_v59  ;;  %v3806_v19 = vpop.eup %3805 }
 0x1bc   :  { %3825 = vpow2.f32 %v2820_v50  ;;  %v2822_v55 = vmul.f32 -1.442695, %v1386_v38  ;;  %v1374_v16 = vmul.f32 %v3804_v34, %v4542_v6  ;;  %v3808_v26 = vpop.eup %3807  ;;  %v1490_v32 = vsel %vm1485_vm12, %v3806_v19, 0 }
 0x1bd   :  { %3827 = vpow2.f32 %v2819_v49  ;;  %v3810_v5 = vpop.eup %3809  ;;  %v4596_v4 = vand.u32 4294901760, %v1490_v32  ;;  %v1493_v10 = vsel %vm1485_vm12, %v3808_v26, 0 }
 0x1be   :  { %3829 = vpow2.f32 %v2822_v55  ;;  %v1376_v28 = vsel %vm1375_vm1, %v4542_v6, %v1374_v16  ;;  %v4599_v30 = vand.u32 4294901760, %v1493_v10  ;;  %v1446_v35 = vadd.f32 1.0, %v3810_v5 }
 0x1bf   :  { %v3812_v31 = vpop.eup %3811  ;;  %v1379_v60 = vsel %vm1377_vm2, %v1378_v25, %v1376_v28  ;;  %3831 = vrcp.f32 %v1443_v13  ;;  %v4603_v52 = vsub.f32 %v1490_v32, %v4596_v4 }
 0x1c0   :  { %v3814_v40 = vpop.eup %3813  ;;  %v2821_v43 = vmul.f32 -1.442695, %v1379_v60  ;;  %v1487_v45 = vsel %vm1485_vm12, %v3812_v31, 0  ;;  %3833 = vrcp.f32 %v1444_v21  ;;  %v4608_v11 = vsub.f32 %v1493_v10, %v4599_v30 }
 0x1c1   :  { %v3816_v53 = vpop.eup %3815  ;;  %v4605_v6 = vand.u32 4294901760, %v1487_v45  ;;  %v1496_v17 = vsel %vm1485_vm12, %v3814_v40, 0  ;;  %3835 = vrcp.f32 %v1446_v35  ;;  %v1616_v27 = vand.u32 4294901760, %v4603_v52 }
 0x1c2   :  { %v3818_v23 = vpop.eup %3817  ;;  %3837 = vpow2.f32 %v2821_v43  ;;  %v4612_v29 = vand.u32 4294901760, %v1496_v17  ;;  %v1499_v18 = vsel %vm1485_vm12, %v3816_v53, 0  ;;  %v1626_v58 = vand.u32 4294901760, %v4608_v11 }
 0x1c3   :  { %v3820_v44 = vpop.eup %3819  ;;  %v4616_v51 = vsub.f32 %v1487_v45, %v4605_v6  ;;  %v4619_v3 = vand.u32 4294901760, %v1499_v18  ;;  %v1445_v20 = vadd.f32 1.0, %v3818_v23  ;;  %v1617_v15 = vsub.f32 %v4603_v52, %v1616_v27 }
 0x1c4   :  { %v3822_v14 = vpop.eup %3821  ;;  %v4622_v2 = vsub.f32 %v1496_v17, %v4612_v29  ;;  %v1502_v9 = vsel %vm1485_vm12, %v3820_v44, 0  ;;  %v1627_v7 = vsub.f32 %v4608_v11, %v1626_v58 }
 0x1c5   :  { %v3824_v33 = vpop.eup %3823  ;;  %v1606_v36 = vand.u32 4294901760, %v4616_v51  ;;  %v4630_v41 = vsub.f32 %v1499_v18, %v4619_v3  ;;  %v4632_v8 = vand.u32 4294901760, %v1502_v9  ;;  %v1505_v62 = vsel %vm1485_vm12, %v3822_v14, 0 }
 0x1c6   :  { %v3826_v22 = vpop.eup %3825  ;;  %v1636_v42 = vand.u32 4294901760, %v4622_v2  ;;  %v1508_v47 = vsel %vm1485_vm12, %v3824_v33, 0  ;;  %v1628_v24 = vand.u32 4294901760, %v1627_v7  ;;  %v4650_v12 = vand.u32 4294901760, %v1505_v62 }
 0x1c7   :  { %v3828_v63 = vpop.eup %3827  ;;  %v1607_v0 = vsub.f32 %v4616_v51, %v1606_v36  ;;  %v1646_v48 = vand.u32 4294901760, %v4630_v41  ;;  %v4645_v59 = vsub.f32 %v1502_v9, %v4632_v8  ;;  %v4652_v34 = vand.u32 4294901760, %v1508_v47 }
 0x1c8   :  { %v3830_v50 = vpop.eup %3829  ;;  %v1637_v56 = vsub.f32 %v4622_v2, %v1636_v42  ;;  %3839 = vrcp.f32 %v1445_v20  ;;  %v1447_v55 = vadd.f32 1.0, %v3828_v63  ;;  %v1618_v21 = vand.u32 4294901760, %v1617_v15 }
 0x1c9   :  { %v3832_v49 = vpop.eup %3831  ;;  %v1608_v38 = vand.u32 4294901760, %v1607_v0  ;;  %v1647_v13 = vsub.f32 %v4630_v41, %v1646_v48  ;;  %v1656_v19 = vand.u32 4294901760, %v4645_v59  ;;  %v4659_v26 = vsub.f32 %v1505_v62, %v4650_v12 }
 0x1ca   :  { %v3834_v16 = vpop.eup %3833  ;;  %v4662_v25 = vsub.f32 %v1508_v47, %v4652_v34  ;;  %v1511_v32 = vsel %vm1485_vm12, %v3832_v49, 0  ;;  %v1638_v28 = vand.u32 4294901760, %v1637_v56  ;;  %3841 = vrcp.f32 %v1447_v55 }
 0x1cb   :  { %v3836_v5 = vpop.eup %3835  ;;  %3317 = vmatprep.mubr.f32.mxu1 %v1608_v38  ;;  %v4665_v10 = vand.u32 4294901760, %v1511_v32  ;;  %v1514_v31 = vsel %vm1485_vm12, %v3834_v16, 0  ;;  %v1648_v35 = vand.u32 4294901760, %v1647_v13  ;;  %v1666_v40 = vand.u32 4294901760, %v4659_v26 }
 0x1cc   :  { %v3838_v60 = vpop.eup %3837  ;;  %3318 = vmatmul.mubr.f32.vlgmr.msra.gmra.mrb[0].mxu1 %v1618_v21  ;;  %v4669_v43 = vand.u32 4294901760, %v1514_v31  ;;  %v1520_v45 = vsel %vm1485_vm12, %v3836_v5, 0  ;;  %v1657_v53 = vsub.f32 %v4645_v59, %v1656_v19  ;;  %v1676_v17 = vand.u32 4294901760, %v4662_v25 }
 0x1cd   :  { %3560 = vmatpush3.bf16.msra.mxu1 %v4434_v54  ;;  %3320 = vmatprep.mubr.f32.mxu1 %v1628_v24  ;;  %v4678_v23 = vsub.f32 %v1511_v32, %v4665_v10  ;;  %v1667_v18 = vsub.f32 %v4659_v26, %v1666_v40  ;;  %v4686_v14 = vand.u32 4294901760, %v1520_v45  ;;  %v1448_v54 = vadd.f32 1.0, %v3826_v22 }
 0x1ce   :  { %v4684_v44 = vsub.f32 %v1514_v31, %v4669_v43  ;;  %3562 = vmatprep.subr.bf16.mxu1 %v4439_v57  ;;  %v1449_v20 = vadd.f32 1.0, %v3838_v60  ;;  %v1450_v33 = vadd.f32 1.0, %v3830_v50  ;;  %v1658_v7 = vand.u32 4294901760, %v1657_v53 }
 0x1cf   :  { %v1686_v9 = vand.u32 4294901760, %v4678_v23  ;;  %3843 = vrcp.f32 %v1448_v54  ;;  %v1668_v15 = vand.u32 4294901760, %v1667_v18  ;;  %v1677_v22 = vsub.f32 %v4662_v25, %v1676_v17 }
 0x1d0   :  { %3321 = vmatmul.mubr.f32.gmra.mrb[2].mxu1 %v1638_v28  ;;  %3845 = vrcp.f32 %v1449_v20  ;;  %v1696_v63 = vand.u32 4294901760, %v4684_v44  ;;  %v4698_v0 = vsub.f32 %v1520_v45, %v4686_v14 }
 0x1d1   :  { %3323 = vmatprep.mubr.f32.mxu1 %v1648_v35  ;;  %v1687_v62 = vsub.f32 %v4678_v23, %v1686_v9  ;;  %3847 = vrcp.f32 %v1450_v33  ;;  %v1678_v49 = vand.u32 4294901760, %v1677_v22 }
 0x1d2   :  { %v3840_v47 = vpop.eup %3839  ;;  %v1697_v38 = vsub.f32 %v4684_v44, %v1696_v63  ;;  %v1716_v55 = vand.u32 4294901760, %v4698_v0 }
 0x1d3   :  { %v1517_v24 = vsel %vm1485_vm12, %v3840_v47, 0  ;;  %v1688_v56 = vand.u32 4294901760, %v1687_v62 }
 0x1d4   :  { %3324 = vmatmul.mubr.f32.gmra.mrb[4].mxu1 %v1658_v7  ;;  %v4701_v50 = vand.u32 4294901760, %v1517_v24  ;;  %v3842_v16 = vpop.eup %3841  ;;  %v1698_v31 = vand.u32 4294901760, %v1697_v38  ;;  %v1717_v35 = vsub.f32 %v4698_v0, %v1716_v55 }
 0x1d5   :  { %3326 = vmatprep.mubr.f32.mxu1 %v1668_v15  ;;  %v1523_v32 = vsel %vm1485_vm12, %v3842_v16, 0 }
 0x1d6   :  { %v4707_v13 = vsub.f32 %v1517_v24, %v4701_v50  ;;  %v4712_v5 = vand.u32 4294901760, %v1523_v32  ;;  %v1718_v22 = vand.u32 4294901760, %v1717_v35 }
 0x1d8   :  { %3327 = vmatmul.mubr.f32.gmra.mrb[6].mxu1 %v1678_v49  ;;  %v1706_v21 = vand.u32 4294901760, %v4707_v13  ;;  %v4721_v53 = vsub.f32 %v1523_v32, %v4712_v5 }
 0x1d9   :  { %3329 = vmatprep.mubr.f32.mxu1 %v1688_v56  ;;  %v3844_v28 = vpop.eup %3843 }
 0x1da   :  { %v1707_v60 = vsub.f32 %v4707_v13, %v1706_v21  ;;  %v3846_v45 = vpop.eup %3845  ;;  %v1526_v18 = vsel %vm1485_vm12, %v3844_v28, 0  ;;  %v1726_v15 = vand.u32 4294901760, %v4721_v53 }
 0x1db   :  { %v3848_v54 = vpop.eup %3847  ;;  %v4724_v33 = vand.u32 4294901760, %v1526_v18  ;;  %v1529_v7 = vsel %vm1485_vm12, %v3846_v45, 0 }
 0x1dc   :  { %3330 = vmatmul.mubr.f32.gmra.mrb[8].mxu1 %v1698_v31  ;;  %v1708_v20 = vand.u32 4294901760, %v1707_v60  ;;  %v4728_v62 = vand.u32 4294901760, %v1529_v7  ;;  %v1532_v47 = vsel %vm1485_vm12, %v3848_v54, 0  ;;  %v1727_v49 = vsub.f32 %v4721_v53, %v1726_v15 }
 0x1dd   :  { %v4732_v24 = vsub.f32 %v1526_v18, %v4724_v33  ;;  %v4734_v56 = vand.u32 4294901760, %v1532_v47 }
 0x1de   :  { %3332 = vmatprep.mubr.f32.mxu1 %v1708_v20  ;;  %v4740_v38 = vsub.f32 %v1529_v7, %v4728_v62  ;;  %v1728_v28 = vand.u32 4294901760, %v1727_v49 }
 0x1df   :  { %v1736_v16 = vand.u32 4294901760, %v4732_v24  ;;  %v4744_v32 = vsub.f32 %v1532_v47, %v4734_v56 }
 0x1e0   :  { %3333 = vmatmul.mubr.f32.gmra.mrb[10].mxu1 %v1718_v22  ;;  %v1746_v31 = vand.u32 4294901760, %v4740_v38 }
 0x1e1   :  { %v1737_v60 = vsub.f32 %v4732_v24, %v1736_v16  ;;  %v1756_v35 = vand.u32 4294901760, %v4744_v32  ;;  %3335 = vmatprep.mubr.f32.mxu1 %v1728_v28 }
 0x1e2   :  { %v1747_v45 = vsub.f32 %v4740_v38, %v1746_v31 }
 0x1e3   :  { %v1738_v18 = vand.u32 4294901760, %v1737_v60  ;;  %v1757_v54 = vsub.f32 %v4744_v32, %v1756_v35 }
 0x1e4   :  { %v1748_v20 = vand.u32 4294901760, %v1747_v45 }
 0x1e5   :  { %3336 = vmatmul.mubr.f32.gmra.mrb[12].mxu1 %v1738_v18  ;;  %v1758_v7 = vand.u32 4294901760, %v1757_v54 }
 0x1e6   :  { %3338 = vmatprep.mubr.f32.mxu1 %v1748_v20 }
 0x1e9   :  { %3339 = vmatmul.mubr.f32.gmra.mrb[14].mxu1 %v1758_v7 }
 0x1ea   :  { %3345 = vmatprep.mubr.f32.mxu1 %v4605_v6 }
 0x1ed   :  { %3346 = vmatmul.mubr.f32.vlgmr.msra.gmra.mrb[0].mxu1 %v4596_v4 }
 0x1ee   :  { %3348 = vmatprep.mubr.f32.mxu1 %v4599_v30  ;;  %3564 = vmatpush3.bf16.msra.mxu1 %v4439_v57  ;;  %v3569_v57 = vpack.c.bf16 %v1774_v1, %v1767_v61  ;;  %v2824_v61 = vmul.f32 -1.442695, %v4871_v46  ;;  %v4877_v1 = vld [vmem:[%s5119_s0 + $0x18] sm:$0xff] }
 0x1ef   :  { %3566 = vmatprep.subr.bf16.mxu1 %v4418_v37 }
 0x1f1   :  { %3349 = vmatmul.mubr.f32.gmra.mrb[2].mxu1 %v4612_v29 }
 0x1f2   :  { %3351 = vmatprep.mubr.f32.mxu1 %v4619_v3 }
 0x1f5   :  { %3352 = vmatmul.mubr.f32.gmra.mrb[4].mxu1 %v4632_v8 }
 0x1f6   :  { %3354 = vmatprep.mubr.f32.mxu1 %v4650_v12 }
 0x1f9   :  { %3355 = vmatmul.mubr.f32.gmra.mrb[6].mxu1 %v4652_v34 }
 0x1fa   :  { %3357 = vmatprep.mubr.f32.mxu1 %v4665_v10 }
 0x1fd   :  { %3358 = vmatmul.mubr.f32.gmra.mrb[8].mxu1 %v4669_v43 }
 0x1fe   :  { %3360 = vmatprep.mubr.f32.mxu1 %v4701_v50 }
 0x201   :  { %3361 = vmatmul.mubr.f32.gmra.mrb[10].mxu1 %v4686_v14 }
 0x202   :  { %3363 = vmatprep.mubr.f32.mxu1 %v4712_v5 }
 0x205   :  { %3364 = vmatmul.mubr.f32.gmra.mrb[12].mxu1 %v4724_v33 }
 0x206   :  { %3366 = vmatprep.mubr.f32.mxu1 %v4728_v62 }
 0x209   :  { %3367 = vmatmul.mubr.f32.gmra.mrb[14].mxu1 %v4734_v56 }
 0x20a   :  { %3373 = vmatprep.mubr.f32.mxu1 %v4616_v51 }
 0x20d   :  { %3374 = vmatmul.mubr.f32.vlgmr.msra.gmra.mrb[0].mxu1 %v4603_v52 }
 0x20e   :  { %3376 = vmatprep.mubr.f32.mxu1 %v4608_v11  ;;  %3568 = vmatpush3.bf16.msra.mxu1 %v4418_v37 }
 0x20f   :  { %3570 = vmatprep.subr.bf16.mxu1 %v3569_v57 }
 0x211   :  { %3377 = vmatmul.mubr.f32.gmra.mrb[2].mxu1 %v4622_v2 }
 0x212   :  { %3379 = vmatprep.mubr.f32.mxu1 %v4630_v41  ;;  %v4907_v41 = vld [vmem:[%s5119_s0 + $0x30] sm:$0xff] }
 0x215   :  { %3380 = vmatmul.mubr.f32.gmra.mrb[4].mxu1 %v4645_v59 }
 0x216   :  { %3382 = vmatprep.mubr.f32.mxu1 %v4659_v26 }
 0x219   :  { %3383 = vmatmul.mubr.f32.gmra.mrb[6].mxu1 %v4662_v25  ;;  %v4925_v25 = vld [vmem:[%s5119_s0 + $0x58] sm:$0xff] }
 0x21a   :  { %3385 = vmatprep.mubr.f32.mxu1 %v4678_v23 }
 0x21d   :  { %3386 = vmatmul.mubr.f32.gmra.mrb[8].mxu1 %v4684_v44  ;;  %v4931_v44 = vld [vmem:[%s5119_s0 + $0x50] sm:$0xff] }
 0x21e   :  { %3388 = vmatprep.mubr.f32.mxu1 %v4707_v13 }
 0x221   :  { %3389 = vmatmul.mubr.f32.gmra.mrb[10].mxu1 %v4698_v0 }
 0x222   :  { %3391 = vmatprep.mubr.f32.mxu1 %v4721_v53  ;;  %v4949_v53 = vld [vmem:[%s5119_s0 + $0x78] sm:$0xff] }
 0x225   :  { %3392 = vmatmul.mubr.f32.gmra.mrb[12].mxu1 %v4732_v24 }
 0x226   :  { %3394 = vmatprep.mubr.f32.mxu1 %v4740_v38 }
 0x229   :  { %3395 = vmatmul.mubr.f32.gmra.mrb[14].mxu1 %v4744_v32 }
 0x22a   :  { %3401 = vmatprep.mubr.f32.mxu1 %v1606_v36 }
 0x22d   :  { %3402 = vmatmul.mubr.f32.vlgmr.msra.gmra.mrb[0].mxu1 %v1616_v27  ;;  %v4895_v27 = vld [vmem:[%s5119_s0 + $0x20] sm:$0xff] }
 0x22e   :  { %3404 = vmatprep.mubr.f32.mxu1 %v1626_v58  ;;  %3572 = vmatpush3.bf16.msra.mxu1 %v3569_v57  ;;  %v4901_v58 = vld [vmem:[%s5119_s0 + $0x38] sm:$0xff] }
 0x22f   :  { %3574 = vmatprep.subr.bf16.mxu1 %v4418_v37 }
 0x231   :  { %3405 = vmatmul.mubr.f32.gmra.mrb[2].mxu1 %v1636_v42  ;;  %v4913_v42 = vld [vmem:[%s5119_s0 + $0x48] sm:$0xff] }
 0x232   :  { %3407 = vmatprep.mubr.f32.mxu1 %v1646_v48  ;;  %v2832_v48 = vmul.f32 -1.442695, %v4913_v42 }
 0x235   :  { %3408 = vmatmul.mubr.f32.gmra.mrb[4].mxu1 %v1656_v19  ;;  %v4919_v19 = vld [vmem:[%s5119_s0 + $0x40] sm:$0xff] }
 0x236   :  { %3410 = vmatprep.mubr.f32.mxu1 %v1666_v40  ;;  %v2831_v26 = vmul.f32 -1.442695, %v4919_v19 }
 0x239   :  { %3411 = vmatmul.mubr.f32.gmra.mrb[6].mxu1 %v1676_v17 }
 0x23a   :  { %3413 = vmatprep.mubr.f32.mxu1 %v1686_v9  ;;  %v4937_v9 = vld [vmem:[%s5119_s0 + $0x68] sm:$0xff] }
 0x23d   :  { %3414 = vmatmul.mubr.f32.gmra.mrb[8].mxu1 %v1696_v63  ;;  %v2836_v63 = vmul.f32 -1.442695, %v4937_v9 }
 0x23e   :  { %3416 = vmatprep.mubr.f32.mxu1 %v1706_v21 }
 0x241   :  { %3417 = vmatmul.mubr.f32.gmra.mrb[10].mxu1 %v1716_v55  ;;  %v4943_v55 = vld [vmem:[%s5119_s0 + $0x60] sm:$0xff] }
 0x242   :  { %3419 = vmatprep.mubr.f32.mxu1 %v1726_v15  ;;  %v2835_v21 = vmul.f32 -1.442695, %v4943_v55 }
 0x245   :  { %3420 = vmatmul.mubr.f32.gmra.mrb[12].mxu1 %v1736_v16 }
 0x246   :  { %3422 = vmatprep.mubr.f32.mxu1 %v1746_v31 }
 0x249   :  { %3423 = vmatmul.mubr.f32.gmra.mrb[14].mxu1 %v1756_v35 }
 0x24a   :  { %3429 = vmatprep.mubr.f32.mxu1 %v4605_v6 }
 0x24d   :  { %3430 = vmatmul.mubr.f32.vlgmr.msra.gmra.mrb[0].mxu1 %v4596_v4 }
 0x24e   :  { %3432 = vmatprep.mubr.f32.mxu1 %v4599_v30  ;;  %3576 = vmatpush3.bf16.msra.mxu1 %v4418_v37  ;;  %v4865_v37 = vld [vmem:[%s5119_s0] sm:$0xff] }
 0x24f   :  { %v2823_v39 = vmul.f32 -1.442695, %v4865_v37 }
 0x251   :  { %3433 = vmatmul.mubr.f32.gmra.mrb[2].mxu1 %v4612_v29  ;;  %3849 = vpow2.f32 %v2823_v39 }
 0x252   :  { %3435 = vmatprep.mubr.f32.mxu1 %v4619_v3  ;;  %3851 = vpow2.f32 %v2824_v61 }
 0x255   :  { %3436 = vmatmul.mubr.f32.gmra.mrb[4].mxu1 %v4632_v8 }
 0x256   :  { %3438 = vmatprep.mubr.f32.mxu1 %v4650_v12 }
 0x259   :  { %3439 = vmatmul.mubr.f32.gmra.mrb[6].mxu1 %v4652_v34 }
 0x25a   :  { %3441 = vmatprep.mubr.f32.mxu1 %v4665_v10 }
 0x25b   :  { %v3850_v51 = vpop.eup %3849 }
 0x25c   :  { %v3852_v2 = vpop.eup %3851  ;;  %v2689_v36 = vadd.f32 1.0, %v3850_v51 }
 0x25d   :  { %3442 = vmatmul.mubr.f32.gmra.mrb[8].mxu1 %v4669_v43  ;;  %v2690_v59 = vadd.f32 1.0, %v3852_v2 }
 0x25e   :  { %3444 = vmatprep.mubr.f32.mxu1 %v4701_v50 }
 0x261   :  { %3445 = vmatmul.mubr.f32.gmra.mrb[10].mxu1 %v4686_v14 }
 0x262   :  { %3447 = vmatprep.mubr.f32.mxu1 %v4712_v5 }
 0x265   :  { %3448 = vmatmul.mubr.f32.gmra.mrb[12].mxu1 %v4724_v33 }
 0x266   :  { %3450 = vmatprep.mubr.f32.mxu1 %v4728_v62 }
 0x269   :  { %3451 = vmatmul.mubr.f32.gmra.mrb[14].mxu1 %v4734_v56 }
 0x26a   :  { %3457 = vmatprep.mubr.f32.mxu1 %v4605_v6  ;;  %v4889_v6 = vld [vmem:[%s5119_s0 + $0x28] sm:$0xff] }
 0x26b   :  { %v2828_v11 = vmul.f32 -1.442695, %v4889_v6 }
 0x26d   :  { %3458 = vmatmul.mubr.f32.vlgmr.msra.gmra.mrb[0].mxu1 %v4596_v4  ;;  %v2826_v4 = vmul.f32 -1.442695, %v4877_v1 }
 0x26e   :  { %3460 = vmatprep.mubr.f32.mxu1 %v4599_v30  ;;  %v4883_v30 = vld [vmem:[%s5119_s0 + $0x10] sm:$0xff] }
 0x26f   :  { %v2825_v52 = vmul.f32 -1.442695, %v4883_v30  ;;  %3853 = vpow2.f32 %v2826_v4 }
 0x271   :  { %3461 = vmatmul.mubr.f32.gmra.mrb[2].mxu1 %v4612_v29  ;;  %3855 = vpow2.f32 %v2825_v52  ;;  %v2827_v29 = vmul.f32 -1.442695, %v4895_v27 }
 0x272   :  { %3463 = vmatprep.mubr.f32.mxu1 %v4619_v3  ;;  %3857 = vpow2.f32 %v2828_v11  ;;  %v2830_v3 = vmul.f32 -1.442695, %v4901_v58 }
 0x273   :  { %3859 = vpow2.f32 %v2827_v29 }
 0x274   :  { %3861 = vpow2.f32 %v2830_v3 }
 0x275   :  { %3464 = vmatmul.mubr.f32.gmra.mrb[4].mxu1 %v4632_v8  ;;  %v2829_v8 = vmul.f32 -1.442695, %v4907_v41  ;;  %3863 = vrcp.f32 %v2689_v36 }
 0x276   :  { %3466 = vmatprep.mubr.f32.mxu1 %v4650_v12 }
 0x277   :  { %3865 = vpow2.f32 %v2829_v8 }
 0x278   :  { %3867 = vpow2.f32 %v2832_v48 }
 0x279   :  { %3467 = vmatmul.mubr.f32.gmra.mrb[6].mxu1 %v4652_v34  ;;  %v3854_v12 = vpop.eup %3853  ;;  %3869 = vrcp.f32 %v2690_v59 }
 0x27a   :  { %3469 = vmatprep.mubr.f32.mxu1 %v4665_v10  ;;  %v2834_v10 = vmul.f32 -1.442695, %v4925_v25  ;;  %v2692_v40 = vadd.f32 1.0, %v3854_v12  ;;  %3871 = vpow2.f32 %v2831_v26 }
 0x27b   :  { %v3856_v34 = vpop.eup %3855 }
 0x27c   :  { %v2691_v17 = vadd.f32 1.0, %v3856_v34  ;;  %3873 = vpow2.f32 %v2834_v10 }
 0x27d   :  { %3470 = vmatmul.mubr.f32.gmra.mrb[8].mxu1 %v4669_v43  ;;  %v3858_v43 = vpop.eup %3857  ;;  %3875 = vrcp.f32 %v2692_v40 }
 0x27e   :  { %3472 = vmatprep.mubr.f32.mxu1 %v4701_v50  ;;  %v3860_v23 = vpop.eup %3859  ;;  %v2694_v0 = vadd.f32 1.0, %v3858_v43  ;;  %3877 = vrcp.f32 %v2691_v17 }
 0x27f   :  { %v3862_v50 = vpop.eup %3861  ;;  %v2693_v13 = vadd.f32 1.0, %v3860_v23 }
 0x281   :  { %3473 = vmatmul.mubr.f32.gmra.mrb[10].mxu1 %v4686_v14  ;;  %v2833_v14 = vmul.f32 -1.442695, %v4931_v44 }
 0x282   :  { %3475 = vmatprep.mubr.f32.mxu1 %v4712_v5  ;;  %v3864_v5 = vpop.eup %3863 }
 0x283   :  { %3879 = vpow2.f32 %v2833_v14  ;;  %v3866_v15 = vpop.eup %3865  ;;  %v2737_v24 = vmul.f32 %v4865_v37, %v3864_v5 }
 0x284   :  { %3881 = vpow2.f32 %v2836_v63  ;;  %v3868_v47 = vpop.eup %3867  ;;  %v2695_v38 = vadd.f32 1.0, %v3866_v15 }
 0x285   :  { %3476 = vmatmul.mubr.f32.gmra.mrb[12].mxu1 %v4724_v33  ;;  %v2838_v33 = vmul.f32 -1.442695, %v4949_v53  ;;  %3883 = vrcp.f32 %v2694_v0  ;;  %v3870_v22 = vpop.eup %3869  ;;  %v2698_v32 = vadd.f32 1.0, %v3868_v47  ;;  %2754 = vst.msk [vmem:[%s5121_s3] sm:$0xff] %vm2753_vm3, %v2737_v24 }
 0x286   :  { %3478 = vmatprep.mubr.f32.mxu1 %v4728_v62  ;;  %v2696_v62 = vadd.f32 1.0, %v3862_v50  ;;  %3885 = vrcp.f32 %v2693_v13  ;;  %v3872_v16 = vpop.eup %3871  ;;  %v2738_v31 = vmul.f32 %v4871_v46, %v3870_v22 }
 0x287   :  { %3887 = vpow2.f32 %v2835_v21  ;;  %v3874_v28 = vpop.eup %3873  ;;  %v2697_v45 = vadd.f32 1.0, %v3872_v16 }
 0x288   :  { %3889 = vpow2.f32 %v2838_v33  ;;  %v3876_v60 = vpop.eup %3875  ;;  %2755 = vst.msk [vmem:[%s5121_s3 + $0x8] sm:$0xff] %vm2753_vm3, %v2738_v31  ;;  %v2700_v54 = vadd.f32 1.0, %v3874_v28 }
 0x289   :  { %3479 = vmatmul.mubr.f32.gmra.mrb[14].mxu1 %v4734_v56  ;;  %v4956_v56 = vld [vmem:[%s5119_s0 + $0x70] sm:$0xff]  ;;  %3891 = vrcp.f32 %v2696_v62  ;;  %v3878_v35 = vpop.eup %3877  ;;  %v2740_v7 = vmul.f32 %v4877_v1, %v3876_v60 }
 0x28a   :  { %v2837_v49 = vmul.f32 -1.442695, %v4956_v56  ;;  %v2739_v11 = vmul.f32 %v4883_v30, %v3878_v35 }
 0x28b   :  { %2757 = vst.msk [vmem:[%s5121_s3 + $0x18] sm:$0xff] %vm2753_vm3, %v2740_v7 }
 0x28c   :  { %3893 = vpow2.f32 %v2837_v49  ;;  %2756 = vst.msk [vmem:[%s5121_s3 + $0x10] sm:$0xff] %vm2753_vm3, %v2739_v11 }
 0x28d   :  { %3895 = vrcp.f32 %v2695_v38  ;;  %v3880_v18 = vpop.eup %3879 }
 0x28e   :  { %3897 = vrcp.f32 %v2698_v32  ;;  %v3882_v20 = vpop.eup %3881  ;;  %v2699_v61 = vadd.f32 1.0, %v3880_v18 }
 0x28f   :  { %v3884_v57 = vpop.eup %3883  ;;  %3899 = vrcp.f32 %v2697_v45  ;;  %v2702_v52 = vadd.f32 1.0, %v3882_v20 }
 0x290   :  { %v3886_v39 = vpop.eup %3885  ;;  %3901 = vrcp.f32 %v2700_v54  ;;  %v2742_v51 = vmul.f32 %v4889_v6, %v3884_v57 }
 0x291   :  { %v3888_v4 = vpop.eup %3887  ;;  %3903 = vrcp.f32 %v2699_v61  ;;  %v2741_v48 = vmul.f32 %v4895_v27, %v3886_v39 }
 0x292   :  { %v3890_v29 = vpop.eup %3889  ;;  %v2701_v2 = vadd.f32 1.0, %v3888_v4  ;;  %2759 = vst.msk [vmem:[%s5121_s3 + $0x28] sm:$0xff] %vm2753_vm3, %v2742_v51  ;;  %3905 = vrcp.f32 %v2702_v52 }
 0x293   :  { %v3892_v3 = vpop.eup %3891  ;;  %v2704_v8 = vadd.f32 1.0, %v3890_v29  ;;  %2758 = vst.msk [vmem:[%s5121_s3 + $0x20] sm:$0xff] %vm2753_vm3, %v2741_v48 }
 0x294   :  { %v2744_v12 = vmul.f32 %v4901_v58, %v3892_v3  ;;  %3907 = vrcp.f32 %v2701_v2 }
 0x295   :  { %3909 = vrcp.f32 %v2704_v8 }
 0x296   :  { %v3894_v36 = vpop.eup %3893  ;;  %2761 = vst.msk [vmem:[%s5121_s3 + $0x38] sm:$0xff] %vm2753_vm3, %v2744_v12 }
 0x297   :  { %v3896_v59 = vpop.eup %3895  ;;  %v2703_v26 = vadd.f32 1.0, %v3894_v36 }
 0x298   :  { %v3898_v34 = vpop.eup %3897  ;;  %v2743_v10 = vmul.f32 %v4907_v41, %v3896_v59 }
 0x299   :  { %v3900_v40 = vpop.eup %3899  ;;  %v2746_v43 = vmul.f32 %v4913_v42, %v3898_v34  ;;  %3911 = vrcp.f32 %v2703_v26 }
 0x29a   :  { %v3902_v17 = vpop.eup %3901  ;;  %2760 = vst.msk [vmem:[%s5121_s3 + $0x30] sm:$0xff] %vm2753_vm3, %v2743_v10  ;;  %v2745_v23 = vmul.f32 %v4919_v19, %v3900_v40 }
 0x29b   :  { %2763 = vst.msk [vmem:[%s5121_s3 + $0x48] sm:$0xff] %vm2753_vm3, %v2746_v43  ;;  %v3904_v14 = vpop.eup %3903  ;;  %v2748_v63 = vmul.f32 %v4925_v25, %v3902_v17 }
 0x29c   :  { %v3906_v0 = vpop.eup %3905  ;;  %2762 = vst.msk [vmem:[%s5121_s3 + $0x40] sm:$0xff] %vm2753_vm3, %v2745_v23  ;;  %v2747_v50 = vmul.f32 %v4931_v44, %v3904_v14 }
 0x29d   :  { %2765 = vst.msk [vmem:[%s5121_s3 + $0x58] sm:$0xff] %vm2753_vm3, %v2748_v63  ;;  %v2750_v21 = vmul.f32 %v4937_v9, %v3906_v0 }
 0x29e   :  { %v3908_v13 = vpop.eup %3907  ;;  %2764 = vst.msk [vmem:[%s5121_s3 + $0x50] sm:$0xff] %vm2753_vm3, %v2747_v50 }
 0x29f   :  { %v3910_v5 = vpop.eup %3909  ;;  %2767 = vst.msk [vmem:[%s5121_s3 + $0x68] sm:$0xff] %vm2753_vm3, %v2750_v21  ;;  %v2749_v33 = vmul.f32 %v4943_v55, %v3908_v13 }
 0x2a0   :  { %v2752_v62 = vmul.f32 %v4949_v53, %v3910_v5 }
 0x2a1   :  { %2766 = vst.msk [vmem:[%s5121_s3 + $0x60] sm:$0xff] %vm2753_vm3, %v2749_v33 }
 0x2a2   :  { %2769 = vst.msk [vmem:[%s5121_s3 + $0x78] sm:$0xff] %vm2753_vm3, %v2752_v62 }
 0x2a3   :  { %v3912_v15 = vpop.eup %3911 }
 0x2a4   :  { %v2751_v47 = vmul.f32 %v4956_v56, %v3912_v15 }
 0x2a6   :  { %2768 = vst.msk [vmem:[%s5121_s3 + $0x70] sm:$0xff] %vm2753_vm3, %v2751_v47 }
 0x340   :  { %v3459_v22 = vpop.f32.mrb[0].mxu1 }
 0x341   :  { %v2771_v24 = vmul.f32 %v4871_v46, %v3459_v22  ;;  %v2547_v49 = vpop.f32.mrb[1].mxu1 }
 0x342   :  { %v2770_v38 = vmul.f32 %v4865_v37, %v2547_v49 }
 0x343   :  { %2788 = vst.msk [vmem:[%s5121_s3 + $0x8] sm:$0xff] %vm2786_vm4, %v2771_v24 }
 0x344   :  { %2787 = vst.msk [vmem:[%s5121_s3] sm:$0xff] %vm2786_vm4, %v2770_v38  ;;  %v3462_v16 = vpop.f32.mrb[2].mxu1 }
 0x345   :  { %v2773_v32 = vmul.f32 %v4877_v1, %v3462_v16  ;;  %v2559_v28 = vpop.f32.mrb[3].mxu1 }
 0x346   :  { %v2772_v31 = vmul.f32 %v4883_v30, %v2559_v28 }
 0x347   :  { %2790 = vst.msk [vmem:[%s5121_s3 + $0x18] sm:$0xff] %vm2786_vm4, %v2773_v32 }
 0x348   :  { %2789 = vst.msk [vmem:[%s5121_s3 + $0x10] sm:$0xff] %vm2786_vm4, %v2772_v31  ;;  %v3465_v37 = vpop.f32.mrb[4].mxu1 }
 0x349   :  { %v2775_v46 = vmul.f32 %v4889_v6, %v3465_v37  ;;  %v2571_v60 = vpop.f32.mrb[5].mxu1 }
 0x34a   :  { %v2774_v35 = vmul.f32 %v4895_v27, %v2571_v60 }
 0x34b   :  { %2792 = vst.msk [vmem:[%s5121_s3 + $0x28] sm:$0xff] %vm2786_vm4, %v2775_v46 }
 0x34c   :  { %2791 = vst.msk [vmem:[%s5121_s3 + $0x20] sm:$0xff] %vm2786_vm4, %v2774_v35  ;;  %v3468_v1 = vpop.f32.mrb[6].mxu1 }
 0x34d   :  { %v2777_v30 = vmul.f32 %v4901_v58, %v3468_v1  ;;  %v2583_v45 = vpop.f32.mrb[7].mxu1 }
 0x34e   :  { %v2776_v18 = vmul.f32 %v4907_v41, %v2583_v45 }
 0x34f   :  { %2794 = vst.msk [vmem:[%s5121_s3 + $0x38] sm:$0xff] %vm2786_vm4, %v2777_v30 }
 0x350   :  { %2793 = vst.msk [vmem:[%s5121_s3 + $0x30] sm:$0xff] %vm2786_vm4, %v2776_v18  ;;  %v3471_v6 = vpop.f32.mrb[8].mxu1 }
 0x351   :  { %v2779_v27 = vmul.f32 %v4913_v42, %v3471_v6  ;;  %v2595_v54 = vpop.f32.mrb[9].mxu1 }
 0x352   :  { %v2778_v20 = vmul.f32 %v4919_v19, %v2595_v54 }
 0x353   :  { %2796 = vst.msk [vmem:[%s5121_s3 + $0x48] sm:$0xff] %vm2786_vm4, %v2779_v27 }
 0x354   :  { %2795 = vst.msk [vmem:[%s5121_s3 + $0x40] sm:$0xff] %vm2786_vm4, %v2778_v20  ;;  %v3474_v58 = vpop.f32.mrb[10].mxu1 }
 0x355   :  { %v2781_v41 = vmul.f32 %v4925_v25, %v3474_v58  ;;  %v2607_v7 = vpop.f32.mrb[11].mxu1 }
 0x356   :  { %v2780_v57 = vmul.f32 %v4931_v44, %v2607_v7 }
 0x357   :  { %2798 = vst.msk [vmem:[%s5121_s3 + $0x58] sm:$0xff] %vm2786_vm4, %v2781_v41 }
 0x358   :  { %2797 = vst.msk [vmem:[%s5121_s3 + $0x50] sm:$0xff] %vm2786_vm4, %v2780_v57  ;;  %v3477_v42 = vpop.f32.mrb[12].mxu1 }
 0x359   :  { %v2783_v19 = vmul.f32 %v4937_v9, %v3477_v42  ;;  %v2619_v39 = vpop.f32.mrb[13].mxu1 }
 0x35a   :  { %v2782_v61 = vmul.f32 %v4943_v55, %v2619_v39 }
 0x35b   :  { %2800 = vst.msk [vmem:[%s5121_s3 + $0x68] sm:$0xff] %vm2786_vm4, %v2783_v19 }
 0x35c   :  { %2799 = vst.msk [vmem:[%s5121_s3 + $0x60] sm:$0xff] %vm2786_vm4, %v2782_v61  ;;  %v3480_v25 = vpop.f32.mrb[14].mxu1 }
 0x35d   :  { %v2785_v44 = vmul.f32 %v4949_v53, %v3480_v25  ;;  %v2631_v4 = vpop.f32.mrb[15].mxu1 }
 0x35e   :  { %v2784_v52 = vmul.f32 %v4956_v56, %v2631_v4 }
 0x35f   :  { %2802 = vst.msk [vmem:[%s5121_s3 + $0x78] sm:$0xff] %vm2786_vm4, %v2785_v44 }
 0x360   :  { %2801 = vst.msk [vmem:[%s5121_s3 + $0x70] sm:$0xff] %vm2786_vm4, %v2784_v52 }

</bundles_post_ra>
